<compile_context>
chip_gen: v7x
topology: tpu7x:2x2x1
jax: 0.10.0
libtpu: 0.0.40
codegen_flags: <defaults>
</compile_context>

<pallas_src>
import functools

import jax
import jax.numpy as jnp
from jax.experimental import pallas as pl
from jax.experimental.pallas import tpu as pltpu


# ------------------------------ small helpers -------------------------------

def _round_up(x, m):
    return ((x + m - 1) // m) * m


def _vmem_limit(working_bytes):
    # Generous headroom for double-buffering, capped well below the smallest
    # physical VMEM (v7x: 64 MiB per TensorCore).
    return int(min(32 * 1024 * 1024, max(8 * 1024 * 1024, 4 * working_bytes)))


def _pick_tile_m(m):
    m8 = _round_up(m, 8)
    return m8 if m8 <= 1024 else 512


def _pick_tile_lane(n, cap=512):
    n128 = _round_up(n, 128)
    if n128 <= cap:
        return n128
    for t in (cap, 256, 128):
        if n128 % t == 0:
            return t
    return 128


# --------------------------- tiled GEMM (+epilogue) --------------------------

def _make_gemm_kernel(has_bias, activation):
    def kernel(*refs):
        if has_bias:
            a_ref, b_ref, bias_ref, o_ref, acc_ref = refs
        else:
            a_ref, b_ref, o_ref, acc_ref = refs
            bias_ref = None
        k = pl.program_id(2)

        @pl.when(k == 0)
        def _init():
            acc_ref[...] = jnp.zeros_like(acc_ref)

        acc_ref[...] += jnp.dot(a_ref[...], b_ref[...],
                                preferred_element_type=jnp.float32)

        @pl.when(k == pl.num_programs(2) - 1)
        def _finalize():
            y = acc_ref[...]
            if bias_ref is not None:
                y = y + bias_ref[...]
            if activation == "relu":
                y = jnp.maximum(y, 0.0)
            elif activation == "tanh":
                y = jnp.tanh(y)
            o_ref[...] = y.astype(o_ref.dtype)

    return kernel


def pallas_matmul(a, b, bias=None, activation=None):
    """Tiled (M, K) @ (K, N): bf16 MXU inputs, f32 accumulation in VMEM,
    fused bias / activation epilogue, pipelined grid over (M, N, K)."""
    m, k = a.shape
    k2, n = b.shape
    assert k == k2, (a.shape, b.shape)

    tm = _pick_tile_m(m)
    tn = _pick_tile_lane(n)
    tk = _pick_tile_lane(k)
    mp, kp, np_ = _round_up(m, tm), _round_up(k, tk), _round_up(n, tn)

    a_p = jnp.pad(a, ((0, mp - m), (0, kp - k))).astype(jnp.bfloat16)
    b_p = jnp.pad(b, ((0, kp - k), (0, np_ - n))).astype(jnp.bfloat16)

    in_specs = [pl.BlockSpec((tm, tk), lambda i, j, kk: (i, kk)),
                pl.BlockSpec((tk, tn), lambda i, j, kk: (kk, j))]
    inputs = [a_p, b_p]
    if bias is not None:
        bias_p = jnp.pad(bias.astype(jnp.float32).reshape(1, n),
                         ((0, 0), (0, np_ - n)))
        in_specs.append(pl.BlockSpec((1, tn), lambda i, j, kk: (0, j)))
        inputs.append(bias_p)

    working = (2 * tm * tk * 2 + 2 * tk * tn * 2 + 2 * tm * tn * 4
               + tm * tn * 4 + (2 * tn * 4 if bias is not None else 0))

    out = pl.pallas_call(
        _make_gemm_kernel(bias is not None, activation),
        out_shape=jax.ShapeDtypeStruct((mp, np_), jnp.float32),
        grid_spec=pltpu.PrefetchScalarGridSpec(
            num_scalar_prefetch=0,
            grid=(mp // tm, np_ // tn, kp // tk),
            in_specs=in_specs,
            out_specs=pl.BlockSpec((tm, tn), lambda i, j, kk: (i, j)),
            scratch_shapes=[pltpu.VMEM((tm, tn), jnp.float32)]),
        compiler_params=pltpu.CompilerParams(
            dimension_semantics=("parallel", "parallel", "arbitrary"),
            vmem_limit_bytes=_vmem_limit(working)),
    )(*inputs)

    if (mp, np_) != (m, n):
        out = out[:m, :n]
    return out


# ------------------- BatchNorm (train-mode) + ReLU kernels -------------------

def _colstats_kernel(x_ref, sum_ref, sq_ref):
    @pl.when(pl.program_id(0) == 0)
    def _init():
        sum_ref[...] = jnp.zeros_like(sum_ref)
        sq_ref[...] = jnp.zeros_like(sq_ref)

    x = x_ref[...]
    sum_ref[...] += jnp.sum(x, axis=0, keepdims=True)
    sq_ref[...] += jnp.sum(x * x, axis=0, keepdims=True)


def pallas_column_stats(x):
    """Column-wise sum and sum-of-squares of a (rows, cols) f32 array
    (cols % 128 == 0), accumulated across a pipelined reduction grid."""
    r, c = x.shape
    tm = min(_round_up(r, 8), 1024)
    rp = _round_up(r, tm)
    xp = jnp.pad(x, ((0, rp - r), (0, 0)))
    s, ss = pl.pallas_call(
        _colstats_kernel,
        out_shape=(jax.ShapeDtypeStruct((1, c), jnp.float32),
                   jax.ShapeDtypeStruct((1, c), jnp.float32)),
        grid_spec=pltpu.PrefetchScalarGridSpec(
            num_scalar_prefetch=0,
            grid=(rp // tm,),
            in_specs=[pl.BlockSpec((tm, c), lambda i: (i, 0))],
            out_specs=(pl.BlockSpec((1, c), lambda i: (0, 0)),
                       pl.BlockSpec((1, c), lambda i: (0, 0)))),
        compiler_params=pltpu.CompilerParams(
            dimension_semantics=("arbitrary",),
            vmem_limit_bytes=_vmem_limit(2 * tm * c * 4)),
    )(xp)
    return s[0], ss[0]


def _scale_shift_relu_kernel(x_ref, scale_ref, shift_ref, o_ref):
    o_ref[...] = jnp.maximum(x_ref[...] * scale_ref[...] + shift_ref[...], 0.0)


def pallas_scale_shift_relu(x, scale_row, shift_row):
    r, c = x.shape
    tm = min(_round_up(r, 8), 1024)
    rp = _round_up(r, tm)
    xp = jnp.pad(x, ((0, rp - r), (0, 0)))
    out = pl.pallas_call(
        _scale_shift_relu_kernel,
        out_shape=jax.ShapeDtypeStruct((rp, c), jnp.float32),
        grid_spec=pltpu.PrefetchScalarGridSpec(
            num_scalar_prefetch=0,
            grid=(rp // tm,),
            in_specs=[pl.BlockSpec((tm, c), lambda i: (i, 0)),
                      pl.BlockSpec((1, c), lambda i: (0, 0)),
                      pl.BlockSpec((1, c), lambda i: (0, 0))],
            out_specs=pl.BlockSpec((tm, c), lambda i: (i, 0))),
        compiler_params=pltpu.CompilerParams(
            dimension_semantics=("parallel",),
            vmem_limit_bytes=_vmem_limit(3 * tm * c * 4)),
    )(xp, scale_row.astype(jnp.float32), shift_row.astype(jnp.float32))
    return out[:r] if rp != r else out


def pallas_batchnorm_relu(x2d, gamma, beta, eps=1e-5):
    """PyTorch train-mode BatchNorm2d (full-batch biased stats) + ReLU on a
    channels-last flattened activation (M, C), using a lane-dense layout."""
    m, c = x2d.shape
    if c % 128 == 0:
        group = 1
    elif 128 % c == 0 and m % (128 // c) == 0:
        group = 128 // c                     # lane-dense re-layout (M/G, G*C)
    else:
        group = 0                            # fallback: pad channels to 128

    if group:
        xl = x2d.reshape(m // group, group * c)
        s, ss = pallas_column_stats(xl)
        sum_c = s.reshape(group, c).sum(axis=0)
        sq_c = ss.reshape(group, c).sum(axis=0)
    else:
        cp = _round_up(c, 128)
        xl = jnp.pad(x2d, ((0, 0), (0, cp - c)))
        s, ss = pallas_column_stats(xl)
        sum_c, sq_c = s[:c], ss[:c]

    mean = sum_c / m
    var = jnp.maximum(sq_c / m - mean * mean, 0.0)   # biased variance (train BN)
    inv = jax.lax.rsqrt(var + eps)
    scale_c = gamma * inv
    shift_c = beta - mean * scale_c

    if group:
        scale_row = jnp.tile(scale_c, group).reshape(1, group * c)
        shift_row = jnp.tile(shift_c, group).reshape(1, group * c)
        y = pallas_scale_shift_relu(xl, scale_row, shift_row)
        return y.reshape(m, c)
    cp = xl.shape[1]
    scale_row = jnp.pad(scale_c, (0, cp - c)).reshape(1, cp)
    shift_row = jnp.pad(shift_c, (0, cp - c)).reshape(1, cp)
    y = pallas_scale_shift_relu(xl, scale_row, shift_row)
    return y[:, :c]


# --------------- ConvTranspose2d(k=4,s=2,p=1) sub-pixel lowering -------------

# output-row parity -> kernel tap ky used for the window offsets (dy=0, dy=1)
_PHASE_TAPS = {0: (3, 1), 1: (2, 0)}


def _subpixel_patches(x_nhwc):
    """2x2-window stride-1 im2col of the 1-padded NHWC activation.

    Combined with `_deconv_weight_subpixel` and `_pixel_shuffle`, this computes
    ConvTranspose2d(k=4, s=2, p=1) with no structurally-zero FLOPs."""
    # TODO(synk): gather these patches inside the GEMM kernel (4 shifted input
    # BlockSpecs / manual DMA) instead of materializing them once in HBM.
    n, h, w, c = x_nhwc.shape
    xp = jnp.pad(x_nhwc, ((0, 0), (1, 1), (1, 1), (0, 0)))
    taps = [xp[:, dy:dy + h + 1, dx:dx + w + 1, :]
            for dy in (0, 1) for dx in (0, 1)]
    patches = jnp.concatenate(taps, axis=-1)          # (N, H+1, W+1, 4*C)
    return patches.reshape(n * (h + 1) * (w + 1), 4 * c), (n, h, w)


def _deconv_weight_subpixel(w):
    """ConvTranspose2d weight (C_in, C_out, 4, 4) -> GEMM matrix (4*C_in, 4*C_out).

    Rows are ordered (dy*2+dx)*C_in + ci to match `_subpixel_patches`; column
    block (py*2+px) holds the taps of output phase (py, px)."""
    c_in, c_out, kh, kw = w.shape
    assert (kh, kw) == (4, 4)
    phase_cols = []
    for py in (0, 1):
        for px in (0, 1):
            tap_rows = []
            for dy in (0, 1):
                for dx in (0, 1):
                    tap_rows.append(w[:, :, _PHASE_TAPS[py][dy], _PHASE_TAPS[px][dx]])
            phase_cols.append(jnp.concatenate(tap_rows, axis=0))   # (4*C_in, C_out)
    return jnp.concatenate(phase_cols, axis=1)                     # (4*C_in, 4*C_out)


def _pixel_shuffle(y_flat, in_shape, c_out):
    """Interleave the 4 phase outputs into the (N, 2H, 2W, C_out) image."""
    n, h, w = in_shape
    y = y_flat.reshape(n, h + 1, w + 1, 4, c_out)
    y00 = y[:, 0:h,     0:w,     0, :]
    y01 = y[:, 0:h,     1:w + 1, 1, :]
    y10 = y[:, 1:h + 1, 0:w,     2, :]
    y11 = y[:, 1:h + 1, 1:w + 1, 3, :]
    row0 = jnp.stack([y00, y01], axis=3)              # (N, H, W, 2, C): px
    row1 = jnp.stack([y10, y11], axis=3)
    out = jnp.stack([row0, row1], axis=2)             # (N, H, 2, W, 2, C)
    return out.reshape(n, 2 * h, 2 * w, c_out)


def _deconv(x_nhwc, w_mat, activation=None):
    patches, in_shape = _subpixel_patches(x_nhwc)
    y = pallas_matmul(patches, w_mat, activation=activation)
    return _pixel_shuffle(y, in_shape, w_mat.shape[1] // 4)


# ------------------------------- Generator ----------------------------------

def init_generator_params(key, z_size, conv_dim):
    """Parameters in their native PyTorch layouts."""
    k = jax.random.split(key, 5)
    s = 0.05
    c4 = conv_dim * 4
    return {
        "fc_w": s * jax.random.normal(k[0], (c4 * 4 * 4, z_size), jnp.float32),
        "fc_b": s * jax.random.normal(k[1], (c4 * 4 * 4,), jnp.float32),
        "d1_w": s * jax.random.normal(k[2], (c4, conv_dim * 2, 4, 4), jnp.float32),
        "d2_w": s * jax.random.normal(k[3], (conv_dim * 2, conv_dim, 4, 4), jnp.float32),
        "d3_w": s * jax.random.normal(k[4], (conv_dim, 3, 4, 4), jnp.float32),
        "d1_gamma": jnp.ones((conv_dim * 2,), jnp.float32),
        "d1_beta": jnp.zeros((conv_dim * 2,), jnp.float32),
        "d2_gamma": jnp.ones((conv_dim,), jnp.float32),
        "d2_beta": jnp.zeros((conv_dim,), jnp.float32),
    }


def prepare_generator_params(p, conv_dim):
    """One-time layout transforms, done outside the jitted forward:
    fc weight transposed + column-permuted into NHWC order, deconv weights
    folded into sub-pixel GEMM matrices, MXU operands cast to bf16."""
    c4 = conv_dim * 4
    z_size = p["fc_w"].shape[1]
    fc_w = (p["fc_w"].reshape(c4, 4, 4, z_size)
            .transpose(1, 2, 0, 3).reshape(c4 * 16, z_size).T)
    fc_b = p["fc_b"].reshape(c4, 4, 4).transpose(1, 2, 0).reshape(-1)
    return {
        "fc_w": fc_w.astype(jnp.bfloat16),
        "fc_b": fc_b.astype(jnp.float32),
        "d1_w": _deconv_weight_subpixel(p["d1_w"]).astype(jnp.bfloat16),
        "d2_w": _deconv_weight_subpixel(p["d2_w"]).astype(jnp.bfloat16),
        "d3_w": _deconv_weight_subpixel(p["d3_w"]).astype(jnp.bfloat16),
        "d1_gamma": p["d1_gamma"], "d1_beta": p["d1_beta"],
        "d2_gamma": p["d2_gamma"], "d2_beta": p["d2_beta"],
    }


def generator_forward(params, z, conv_dim):
    b = z.shape[0]
    c4 = conv_dim * 4

    # fc (bias fused into the GEMM epilogue); columns are pre-permuted so the
    # reshape lands directly in NHWC.
    x = pallas_matmul(z, params["fc_w"], bias=params["fc_b"])
    x = x.reshape(b, 4, 4, c4)                                   # NHWC, 4x4

    # deconv1 -> BatchNorm -> ReLU          (4x4  -> 8x8)
    x = _deconv(x, params["d1_w"])
    n, oh, ow, c = x.shape
    x = pallas_batchnorm_relu(x.reshape(n * oh * ow, c),
                              params["d1_gamma"], params["d1_beta"])
    x = x.reshape(n, oh, ow, c)

    # deconv2 -> BatchNorm -> ReLU          (8x8  -> 16x16)
    x = _deconv(x, params["d2_w"])
    n, oh, ow, c = x.shape
    x = pallas_batchnorm_relu(x.reshape(n * oh * ow, c),
                              params["d2_gamma"], params["d2_beta"])
    x = x.reshape(n, oh, ow, c)

    # deconv3 -> tanh (fused into the GEMM epilogue)   (16x16 -> 32x32)
    x = _deconv(x, params["d3_w"], activation="tanh")

    return x.transpose(0, 3, 1, 2)                      # single NCHW transpose


if __name__ == "__main__":
    z_size = 32
    conv_dim = 8
    batch = 2

    key = jax.random.PRNGKey(0)
    pkey, zkey = jax.random.split(key)
    torch_layout_params = init_generator_params(pkey, z_size, conv_dim)
    params = prepare_generator_params(torch_layout_params, conv_dim)
    z = jax.random.normal(zkey, (batch, z_size), jnp.float32)

    fwd = jax.jit(functools.partial(generator_forward, conv_dim=conv_dim))
    out = jax.block_until_ready(fwd(params, z))

    assert out.shape == (batch, 3, 32, 32), out.shape
    assert out.dtype == jnp.float32
    assert bool(jnp.all(jnp.isfinite(out)))
    print("KERNEL_OK")
</pallas_src>

<mosaic_0001>
module attributes {stable_mosaic.version = 11 : i64} {
  func.func @kernel(%arg0: i32, %arg1: i32, %arg2: i32, %arg3: memref<8x128xbf16, #tpu.memory_space<vmem>>, %arg4: memref<128x512xbf16, #tpu.memory_space<vmem>>, %arg5: memref<1x512xf32, #tpu.memory_space<vmem>>, %arg6: memref<8x512xf32, #tpu.memory_space<vmem>>, %arg7: memref<8x512xf32, #tpu.memory_space<vmem>>) attributes {dimension_semantics = [#tpu.dimension_semantics<parallel>, #tpu.dimension_semantics<parallel>, #tpu.dimension_semantics<arbitrary>], iteration_bounds = array<i64: 1, 1, 1>, scalar_prefetch = 0 : i64, scratch_operands = 1 : i64, tpu.core_type = #tpu.core_type<tc>, window_params = [{transform_indices = @transform_0, window_bounds = array<i64: 8, 128>}, {transform_indices = @transform_1, window_bounds = array<i64: 128, 512>}, {transform_indices = @transform_2, window_bounds = array<i64: 1, 512>}, {transform_indices = @transform_3, window_bounds = array<i64: 8, 512>}]} {
    %c0_i32 = arith.constant 0 : i32
    %0 = arith.cmpi eq, %arg2, %c0_i32 : i32
    %1 = arith.extui %0 : i1 to i32
    %c0_i32_0 = arith.constant 0 : i32
    %2 = arith.cmpi ne, %1, %c0_i32_0 : i32
    scf.if %2 {
      %cst_10 = arith.constant 0.000000e+00 : f32
      %12 = vector.broadcast %cst_10 : f32 to vector<8x512xf32>
      %c0_11 = arith.constant 0 : index
      %c0_12 = arith.constant 0 : index
      %13 = vector.load %arg7[%c0_11, %c0_12] : memref<8x512xf32, #tpu.memory_space<vmem>>, vector<8x512xf32>
      tpu.vector_store %arg7[%c0_11, %c0_12], %12 {strides = array<i32>} : memref<8x512xf32, #tpu.memory_space<vmem>>, vector<8x512xf32>,
    } else {
    }
    %c0 = arith.constant 0 : index
    %c0_1 = arith.constant 0 : index
    %3 = vector.load %arg7[%c0, %c0_1] : memref<8x512xf32, #tpu.memory_space<vmem>>, vector<8x512xf32>
    %c0_2 = arith.constant 0 : index
    %c0_3 = arith.constant 0 : index
    %4 = vector.load %arg3[%c0_2, %c0_3] : memref<8x128xbf16, #tpu.memory_space<vmem>>, vector<8x128xbf16>
    %c0_4 = arith.constant 0 : index
    %c0_5 = arith.constant 0 : index
    %5 = vector.load %arg4[%c0_4, %c0_5] : memref<128x512xbf16, #tpu.memory_space<vmem>>, vector<128x512xbf16>
    %cst = arith.constant dense<0.000000e+00> : vector<8x512xf32>
    %6 = tpu.matmul %4, %5, %cst {dimension_numbers = #tpu.dot_dimension_numbers<[1], [0], [0], [1], [0, 0, 1, 1], [], []>} : vector<8x128xbf16>, vector<128x512xbf16>, vector<8x512xf32> -> vector<8x512xf32>
    %7 = arith.addf %3, %6 : vector<8x512xf32>
    %c0_6 = arith.constant 0 : index
    %c0_7 = arith.constant 0 : index
    %8 = vector.load %arg7[%c0_6, %c0_7] : memref<8x512xf32, #tpu.memory_space<vmem>>, vector<8x512xf32>
    tpu.vector_store %arg7[%c0_6, %c0_7], %7 {strides = array<i32>} : memref<8x512xf32, #tpu.memory_space<vmem>>, vector<8x512xf32>,
    %c0_i32_8 = arith.constant 0 : i32
    %9 = arith.cmpi eq, %arg2, %c0_i32_8 : i32
    %10 = arith.extui %9 : i1 to i32
    %c0_i32_9 = arith.constant 0 : i32
    %11 = arith.cmpi ne, %10, %c0_i32_9 : i32
    scf.if %11 {
      %c0_10 = arith.constant 0 : index
      %c0_11 = arith.constant 0 : index
      %12 = vector.load %arg7[%c0_10, %c0_11] : memref<8x512xf32, #tpu.memory_space<vmem>>, vector<8x512xf32>
      %c0_12 = arith.constant 0 : index
      %c0_13 = arith.constant 0 : index
      %13 = vector.load %arg5[%c0_12, %c0_13] : memref<1x512xf32, #tpu.memory_space<vmem>>, vector<1x512xf32>
      %14 = vector.broadcast %13 : vector<1x512xf32> to vector<8x512xf32>
      %15 = arith.addf %12, %14 : vector<8x512xf32>
      %c0_14 = arith.constant 0 : index
      %c0_15 = arith.constant 0 : index
      %16 = vector.load %arg6[%c0_14, %c0_15] : memref<8x512xf32, #tpu.memory_space<vmem>>, vector<8x512xf32>
      tpu.vector_store %arg6[%c0_14, %c0_15], %15 {strides = array<i32>} : memref<8x512xf32, #tpu.memory_space<vmem>>, vector<8x512xf32>,
    } else {
    }
    return
  }
  func.func @transform_0(%arg0: i32, %arg1: i32, %arg2: i32) -> (i32, i32) {
    %c0_i32 = arith.constant 0 : i32
    return %arg0, %arg2 : i32, i32
  }
  func.func @transform_1(%arg0: i32, %arg1: i32, %arg2: i32) -> (i32, i32) {
    %c0_i32 = arith.constant 0 : i32
    return %arg2, %arg1 : i32, i32
  }
  func.func @transform_2(%arg0: i32, %arg1: i32, %arg2: i32) -> (i32, i32) {
    %c0_i32 = arith.constant 0 : i32
    %c0_i32_0 = arith.constant 0 : i32
    return %c0_i32, %arg1 : i32, i32
  }
  func.func @transform_3(%arg0: i32, %arg1: i32, %arg2: i32) -> (i32, i32) {
    %c0_i32 = arith.constant 0 : i32
    return %arg0, %arg1 : i32, i32
  }
}

module attributes {stable_mosaic.version = 11 : i64} {
  func.func @kernel(%arg0: i32, %arg1: i32, %arg2: i32, %arg3: memref<56x128xbf16, #tpu.memory_space<vmem>>, %arg4: memref<128x128xbf16, #tpu.memory_space<vmem>>, %arg5: memref<56x128xf32, #tpu.memory_space<vmem>>, %arg6: memref<56x128xf32, #tpu.memory_space<vmem>>) attributes {dimension_semantics = [#tpu.dimension_semantics<parallel>, #tpu.dimension_semantics<parallel>, #tpu.dimension_semantics<arbitrary>], iteration_bounds = array<i64: 1, 1, 1>, scalar_prefetch = 0 : i64, scratch_operands = 1 : i64, tpu.core_type = #tpu.core_type<tc>, window_params = [{transform_indices = @transform_0, window_bounds = array<i64: 56, 128>}, {transform_indices = @transform_1, window_bounds = array<i64: 128, 128>}, {transform_indices = @transform_2, window_bounds = array<i64: 56, 128>}]} {
    %c0_i32 = arith.constant 0 : i32
    %0 = arith.cmpi eq, %arg2, %c0_i32 : i32
    %1 = arith.extui %0 : i1 to i32
    %c0_i32_0 = arith.constant 0 : i32
    %2 = arith.cmpi ne, %1, %c0_i32_0 : i32
    scf.if %2 {
      %cst_10 = arith.constant 0.000000e+00 : f32
      %12 = vector.broadcast %cst_10 : f32 to vector<56x128xf32>
      %c0_11 = arith.constant 0 : index
      %c0_12 = arith.constant 0 : index
      %13 = vector.load %arg6[%c0_11, %c0_12] : memref<56x128xf32, #tpu.memory_space<vmem>>, vector<56x128xf32>
      tpu.vector_store %arg6[%c0_11, %c0_12], %12 {strides = array<i32>} : memref<56x128xf32, #tpu.memory_space<vmem>>, vector<56x128xf32>,
    } else {
    }
    %c0 = arith.constant 0 : index
    %c0_1 = arith.constant 0 : index
    %3 = vector.load %arg6[%c0, %c0_1] : memref<56x128xf32, #tpu.memory_space<vmem>>, vector<56x128xf32>
    %c0_2 = arith.constant 0 : index
    %c0_3 = arith.constant 0 : index
    %4 = vector.load %arg3[%c0_2, %c0_3] : memref<56x128xbf16, #tpu.memory_space<vmem>>, vector<56x128xbf16>
    %c0_4 = arith.constant 0 : index
    %c0_5 = arith.constant 0 : index
    %5 = vector.load %arg4[%c0_4, %c0_5] : memref<128x128xbf16, #tpu.memory_space<vmem>>, vector<128x128xbf16>
    %cst = arith.constant dense<0.000000e+00> : vector<56x128xf32>
    %6 = tpu.matmul %4, %5, %cst {dimension_numbers = #tpu.dot_dimension_numbers<[1], [0], [0], [1], [0, 0, 1, 1], [], []>} : vector<56x128xbf16>, vector<128x128xbf16>, vector<56x128xf32> -> vector<56x128xf32>
    %7 = arith.addf %3, %6 : vector<56x128xf32>
    %c0_6 = arith.constant 0 : index
    %c0_7 = arith.constant 0 : index
    %8 = vector.load %arg6[%c0_6, %c0_7] : memref<56x128xf32, #tpu.memory_space<vmem>>, vector<56x128xf32>
    tpu.vector_store %arg6[%c0_6, %c0_7], %7 {strides = array<i32>} : memref<56x128xf32, #tpu.memory_space<vmem>>, vector<56x128xf32>,
    %c0_i32_8 = arith.constant 0 : i32
    %9 = arith.cmpi eq, %arg2, %c0_i32_8 : i32
    %10 = arith.extui %9 : i1 to i32
    %c0_i32_9 = arith.constant 0 : i32
    %11 = arith.cmpi ne, %10, %c0_i32_9 : i32
    scf.if %11 {
      %c0_10 = arith.constant 0 : index
      %c0_11 = arith.constant 0 : index
      %12 = vector.load %arg6[%c0_10, %c0_11] : memref<56x128xf32, #tpu.memory_space<vmem>>, vector<56x128xf32>
      %c0_12 = arith.constant 0 : index
      %c0_13 = arith.constant 0 : index
      %13 = vector.load %arg5[%c0_12, %c0_13] : memref<56x128xf32, #tpu.memory_space<vmem>>, vector<56x128xf32>
      tpu.vector_store %arg5[%c0_12, %c0_13], %12 {strides = array<i32>} : memref<56x128xf32, #tpu.memory_space<vmem>>, vector<56x128xf32>,
    } else {
    }
    return
  }
  func.func @transform_0(%arg0: i32, %arg1: i32, %arg2: i32) -> (i32, i32) {
    %c0_i32 = arith.constant 0 : i32
    return %arg0, %arg2 : i32, i32
  }
  func.func @transform_1(%arg0: i32, %arg1: i32, %arg2: i32) -> (i32, i32) {
    %c0_i32 = arith.constant 0 : i32
    return %arg2, %arg1 : i32, i32
  }
  func.func @transform_2(%arg0: i32, %arg1: i32, %arg2: i32) -> (i32, i32) {
    %c0_i32 = arith.constant 0 : i32
    return %arg0, %arg1 : i32, i32
  }
}

module attributes {stable_mosaic.version = 11 : i64} {
  func.func @_colstats_kernel(%arg0: i32, %arg1: memref<16x128xf32, #tpu.memory_space<vmem>>, %arg2: memref<1x128xf32, #tpu.memory_space<vmem>>, %arg3: memref<1x128xf32, #tpu.memory_space<vmem>>) attributes {dimension_semantics = [#tpu.dimension_semantics<arbitrary>], iteration_bounds = array<i64: 1>, scalar_prefetch = 0 : i64, scratch_operands = 0 : i64, tpu.core_type = #tpu.core_type<tc>, window_params = [{transform_indices = @transform_0, window_bounds = array<i64: 16, 128>}, {pipeline_mode = #tpu.pipeline_mode<synchronous>, transform_indices = @transform_1, window_bounds = array<i64: 1, 128>}, {pipeline_mode = #tpu.pipeline_mode<synchronous>, transform_indices = @transform_2, window_bounds = array<i64: 1, 128>}]} {
    %c0_i32 = arith.constant 0 : i32
    %0 = arith.cmpi eq, %arg0, %c0_i32 : i32
    %1 = arith.extui %0 : i1 to i32
    %c0_i32_0 = arith.constant 0 : i32
    %2 = arith.cmpi ne, %1, %c0_i32_0 : i32
    scf.if %2 {
      %cst_11 = arith.constant 0.000000e+00 : f32
      %15 = vector.broadcast %cst_11 : f32 to vector<1x128xf32>
      %c0_12 = arith.constant 0 : index
      %c0_13 = arith.constant 0 : index
      %16 = vector.load %arg2[%c0_12, %c0_13] : memref<1x128xf32, #tpu.memory_space<vmem>>, vector<1x128xf32>
      tpu.vector_store %arg2[%c0_12, %c0_13], %15 {strides = array<i32>} : memref<1x128xf32, #tpu.memory_space<vmem>>, vector<1x128xf32>,
      %cst_14 = arith.constant 0.000000e+00 : f32
      %17 = vector.broadcast %cst_14 : f32 to vector<1x128xf32>
      %c0_15 = arith.constant 0 : index
      %c0_16 = arith.constant 0 : index
      %18 = vector.load %arg3[%c0_15, %c0_16] : memref<1x128xf32, #tpu.memory_space<vmem>>, vector<1x128xf32>
      tpu.vector_store %arg3[%c0_15, %c0_16], %17 {strides = array<i32>} : memref<1x128xf32, #tpu.memory_space<vmem>>, vector<1x128xf32>,
    } else {
    }
    %c0 = arith.constant 0 : index
    %c0_1 = arith.constant 0 : index
    %3 = vector.load %arg1[%c0, %c0_1] : memref<16x128xf32, #tpu.memory_space<vmem>>, vector<16x128xf32>
    %c0_2 = arith.constant 0 : index
    %c0_3 = arith.constant 0 : index
    %4 = vector.load %arg2[%c0_2, %c0_3] : memref<1x128xf32, #tpu.memory_space<vmem>>, vector<1x128xf32>
    %cst = arith.constant dense<0.000000e+00> : vector<128xf32>
    %5 = vector.multi_reduction <add>, %3, %cst [0] : vector<16x128xf32> to vector<128xf32>
    %6 = vector.shape_cast %5 : vector<128xf32> to vector<1x128xf32>
    %7 = arith.addf %4, %6 : vector<1x128xf32>
    %c0_4 = arith.constant 0 : index
    %c0_5 = arith.constant 0 : index
    %8 = vector.load %arg2[%c0_4, %c0_5] : memref<1x128xf32, #tpu.memory_space<vmem>>, vector<1x128xf32>
    tpu.vector_store %arg2[%c0_4, %c0_5], %7 {strides = array<i32>} : memref<1x128xf32, #tpu.memory_space<vmem>>, vector<1x128xf32>,
    %c0_6 = arith.constant 0 : index
    %c0_7 = arith.constant 0 : index
    %9 = vector.load %arg3[%c0_6, %c0_7] : memref<1x128xf32, #tpu.memory_space<vmem>>, vector<1x128xf32>
    %10 = arith.mulf %3, %3 : vector<16x128xf32>
    %cst_8 = arith.constant dense<0.000000e+00> : vector<128xf32>
    %11 = vector.multi_reduction <add>, %10, %cst_8 [0] : vector<16x128xf32> to vector<128xf32>
    %12 = vector.shape_cast %11 : vector<128xf32> to vector<1x128xf32>
    %13 = arith.addf %9, %12 : vector<1x128xf32>
    %c0_9 = arith.constant 0 : index
    %c0_10 = arith.constant 0 : index
    %14 = vector.load %arg3[%c0_9, %c0_10] : memref<1x128xf32, #tpu.memory_space<vmem>>, vector<1x128xf32>
    tpu.vector_store %arg3[%c0_9, %c0_10], %13 {strides = array<i32>} : memref<1x128xf32, #tpu.memory_space<vmem>>, vector<1x128xf32>,
    return
  }
  func.func @transform_0(%arg0: i32) -> (i32, i32) {
    %c0_i32 = arith.constant 0 : i32
    %c0_i32_0 = arith.constant 0 : i32
    return %arg0, %c0_i32 : i32, i32
  }
  func.func @transform_1(%arg0: i32) -> (i32, i32) {
    %c0_i32 = arith.constant 0 : i32
    %c0_i32_0 = arith.constant 0 : i32
    %c0_i32_1 = arith.constant 0 : i32
    return %c0_i32, %c0_i32_0 : i32, i32
  }
  func.func @transform_2(%arg0: i32) -> (i32, i32) {
    %c0_i32 = arith.constant 0 : i32
    %c0_i32_0 = arith.constant 0 : i32
    %c0_i32_1 = arith.constant 0 : i32
    return %c0_i32, %c0_i32_0 : i32, i32
  }
}

module attributes {stable_mosaic.version = 11 : i64} {
  func.func @_scale_shift_relu_kernel(%arg0: i32, %arg1: memref<16x128xf32, #tpu.memory_space<vmem>>, %arg2: memref<1x128xf32, #tpu.memory_space<vmem>>, %arg3: memref<1x128xf32, #tpu.memory_space<vmem>>, %arg4: memref<16x128xf32, #tpu.memory_space<vmem>>) attributes {dimension_semantics = [#tpu.dimension_semantics<parallel>], iteration_bounds = array<i64: 1>, scalar_prefetch = 0 : i64, scratch_operands = 0 : i64, tpu.core_type = #tpu.core_type<tc>, window_params = [{transform_indices = @transform_0, window_bounds = array<i64: 16, 128>}, {pipeline_mode = #tpu.pipeline_mode<synchronous>, transform_indices = @transform_1, window_bounds = array<i64: 1, 128>}, {pipeline_mode = #tpu.pipeline_mode<synchronous>, transform_indices = @transform_2, window_bounds = array<i64: 1, 128>}, {transform_indices = @transform_3, window_bounds = array<i64: 16, 128>}]} {
    %c0 = arith.constant 0 : index
    %c0_0 = arith.constant 0 : index
    %0 = vector.load %arg1[%c0, %c0_0] : memref<16x128xf32, #tpu.memory_space<vmem>>, vector<16x128xf32>
    %c0_1 = arith.constant 0 : index
    %c0_2 = arith.constant 0 : index
    %1 = vector.load %arg2[%c0_1, %c0_2] : memref<1x128xf32, #tpu.memory_space<vmem>>, vector<1x128xf32>
    %2 = vector.broadcast %1 : vector<1x128xf32> to vector<16x128xf32>
    %3 = arith.mulf %0, %2 : vector<16x128xf32>
    %c0_3 = arith.constant 0 : index
    %c0_4 = arith.constant 0 : index
    %4 = vector.load %arg3[%c0_3, %c0_4] : memref<1x128xf32, #tpu.memory_space<vmem>>, vector<1x128xf32>
    %5 = vector.broadcast %4 : vector<1x128xf32> to vector<16x128xf32>
    %6 = arith.addf %3, %5 : vector<16x128xf32>
    %cst = arith.constant 0.000000e+00 : f32
    %7 = vector.broadcast %cst : f32 to vector<16x128xf32>
    %8 = arith.maximumf %6, %7 : vector<16x128xf32>
    %c0_5 = arith.constant 0 : index
    %c0_6 = arith.constant 0 : index
    %9 = vector.load %arg4[%c0_5, %c0_6] : memref<16x128xf32, #tpu.memory_space<vmem>>, vector<16x128xf32>
    tpu.vector_store %arg4[%c0_5, %c0_6], %8 {strides = array<i32>} : memref<16x128xf32, #tpu.memory_space<vmem>>, vector<16x128xf32>,
    return
  }
  func.func @transform_0(%arg0: i32) -> (i32, i32) {
    %c0_i32 = arith.constant 0 : i32
    %c0_i32_0 = arith.constant 0 : i32
    return %arg0, %c0_i32 : i32, i32
  }
  func.func @transform_1(%arg0: i32) -> (i32, i32) {
    %c0_i32 = arith.constant 0 : i32
    %c0_i32_0 = arith.constant 0 : i32
    %c0_i32_1 = arith.constant 0 : i32
    return %c0_i32, %c0_i32_0 : i32, i32
  }
  func.func @transform_2(%arg0: i32) -> (i32, i32) {
    %c0_i32 = arith.constant 0 : i32
    %c0_i32_0 = arith.constant 0 : i32
    %c0_i32_1 = arith.constant 0 : i32
    return %c0_i32, %c0_i32_0 : i32, i32
  }
  func.func @transform_3(%arg0: i32) -> (i32, i32) {
    %c0_i32 = arith.constant 0 : i32
    %c0_i32_0 = arith.constant 0 : i32
    return %arg0, %c0_i32 : i32, i32
  }
}

module attributes {stable_mosaic.version = 11 : i64} {
  func.func @kernel(%arg0: i32, %arg1: i32, %arg2: i32, %arg3: memref<168x128xbf16, #tpu.memory_space<vmem>>, %arg4: memref<128x128xbf16, #tpu.memory_space<vmem>>, %arg5: memref<168x128xf32, #tpu.memory_space<vmem>>, %arg6: memref<168x128xf32, #tpu.memory_space<vmem>>) attributes {dimension_semantics = [#tpu.dimension_semantics<parallel>, #tpu.dimension_semantics<parallel>, #tpu.dimension_semantics<arbitrary>], iteration_bounds = array<i64: 1, 1, 1>, scalar_prefetch = 0 : i64, scratch_operands = 1 : i64, tpu.core_type = #tpu.core_type<tc>, window_params = [{transform_indices = @transform_0, window_bounds = array<i64: 168, 128>}, {transform_indices = @transform_1, window_bounds = array<i64: 128, 128>}, {transform_indices = @transform_2, window_bounds = array<i64: 168, 128>}]} {
    %c0_i32 = arith.constant 0 : i32
    %0 = arith.cmpi eq, %arg2, %c0_i32 : i32
    %1 = arith.extui %0 : i1 to i32
    %c0_i32_0 = arith.constant 0 : i32
    %2 = arith.cmpi ne, %1, %c0_i32_0 : i32
    scf.if %2 {
      %cst_10 = arith.constant 0.000000e+00 : f32
      %12 = vector.broadcast %cst_10 : f32 to vector<168x128xf32>
      %c0_11 = arith.constant 0 : index
      %c0_12 = arith.constant 0 : index
      %13 = vector.load %arg6[%c0_11, %c0_12] : memref<168x128xf32, #tpu.memory_space<vmem>>, vector<168x128xf32>
      tpu.vector_store %arg6[%c0_11, %c0_12], %12 {strides = array<i32>} : memref<168x128xf32, #tpu.memory_space<vmem>>, vector<168x128xf32>,
    } else {
    }
    %c0 = arith.constant 0 : index
    %c0_1 = arith.constant 0 : index
    %3 = vector.load %arg6[%c0, %c0_1] : memref<168x128xf32, #tpu.memory_space<vmem>>, vector<168x128xf32>
    %c0_2 = arith.constant 0 : index
    %c0_3 = arith.constant 0 : index
    %4 = vector.load %arg3[%c0_2, %c0_3] : memref<168x128xbf16, #tpu.memory_space<vmem>>, vector<168x128xbf16>
    %c0_4 = arith.constant 0 : index
    %c0_5 = arith.constant 0 : index
    %5 = vector.load %arg4[%c0_4, %c0_5] : memref<128x128xbf16, #tpu.memory_space<vmem>>, vector<128x128xbf16>
    %cst = arith.constant dense<0.000000e+00> : vector<168x128xf32>
    %6 = tpu.matmul %4, %5, %cst {dimension_numbers = #tpu.dot_dimension_numbers<[1], [0], [0], [1], [0, 0, 1, 1], [], []>} : vector<168x128xbf16>, vector<128x128xbf16>, vector<168x128xf32> -> vector<168x128xf32>
    %7 = arith.addf %3, %6 : vector<168x128xf32>
    %c0_6 = arith.constant 0 : index
    %c0_7 = arith.constant 0 : index
    %8 = vector.load %arg6[%c0_6, %c0_7] : memref<168x128xf32, #tpu.memory_space<vmem>>, vector<168x128xf32>
    tpu.vector_store %arg6[%c0_6, %c0_7], %7 {strides = array<i32>} : memref<168x128xf32, #tpu.memory_space<vmem>>, vector<168x128xf32>,
    %c0_i32_8 = arith.constant 0 : i32
    %9 = arith.cmpi eq, %arg2, %c0_i32_8 : i32
    %10 = arith.extui %9 : i1 to i32
    %c0_i32_9 = arith.constant 0 : i32
    %11 = arith.cmpi ne, %10, %c0_i32_9 : i32
    scf.if %11 {
      %c0_10 = arith.constant 0 : index
      %c0_11 = arith.constant 0 : index
      %12 = vector.load %arg6[%c0_10, %c0_11] : memref<168x128xf32, #tpu.memory_space<vmem>>, vector<168x128xf32>
      %c0_12 = arith.constant 0 : index
      %c0_13 = arith.constant 0 : index
      %13 = vector.load %arg5[%c0_12, %c0_13] : memref<168x128xf32, #tpu.memory_space<vmem>>, vector<168x128xf32>
      tpu.vector_store %arg5[%c0_12, %c0_13], %12 {strides = array<i32>} : memref<168x128xf32, #tpu.memory_space<vmem>>, vector<168x128xf32>,
    } else {
    }
    return
  }
  func.func @transform_0(%arg0: i32, %arg1: i32, %arg2: i32) -> (i32, i32) {
    %c0_i32 = arith.constant 0 : i32
    return %arg0, %arg2 : i32, i32
  }
  func.func @transform_1(%arg0: i32, %arg1: i32, %arg2: i32) -> (i32, i32) {
    %c0_i32 = arith.constant 0 : i32
    return %arg2, %arg1 : i32, i32
  }
  func.func @transform_2(%arg0: i32, %arg1: i32, %arg2: i32) -> (i32, i32) {
    %c0_i32 = arith.constant 0 : i32
    return %arg0, %arg1 : i32, i32
  }
}

module attributes {stable_mosaic.version = 11 : i64} {
  func.func @_colstats_kernel(%arg0: i32, %arg1: memref<32x128xf32, #tpu.memory_space<vmem>>, %arg2: memref<1x128xf32, #tpu.memory_space<vmem>>, %arg3: memref<1x128xf32, #tpu.memory_space<vmem>>) attributes {dimension_semantics = [#tpu.dimension_semantics<arbitrary>], iteration_bounds = array<i64: 1>, scalar_prefetch = 0 : i64, scratch_operands = 0 : i64, tpu.core_type = #tpu.core_type<tc>, window_params = [{transform_indices = @transform_0, window_bounds = array<i64: 32, 128>}, {pipeline_mode = #tpu.pipeline_mode<synchronous>, transform_indices = @transform_1, window_bounds = array<i64: 1, 128>}, {pipeline_mode = #tpu.pipeline_mode<synchronous>, transform_indices = @transform_2, window_bounds = array<i64: 1, 128>}]} {
    %c0_i32 = arith.constant 0 : i32
    %0 = arith.cmpi eq, %arg0, %c0_i32 : i32
    %1 = arith.extui %0 : i1 to i32
    %c0_i32_0 = arith.constant 0 : i32
    %2 = arith.cmpi ne, %1, %c0_i32_0 : i32
    scf.if %2 {
      %cst_11 = arith.constant 0.000000e+00 : f32
      %15 = vector.broadcast %cst_11 : f32 to vector<1x128xf32>
      %c0_12 = arith.constant 0 : index
      %c0_13 = arith.constant 0 : index
      %16 = vector.load %arg2[%c0_12, %c0_13] : memref<1x128xf32, #tpu.memory_space<vmem>>, vector<1x128xf32>
      tpu.vector_store %arg2[%c0_12, %c0_13], %15 {strides = array<i32>} : memref<1x128xf32, #tpu.memory_space<vmem>>, vector<1x128xf32>,
      %cst_14 = arith.constant 0.000000e+00 : f32
      %17 = vector.broadcast %cst_14 : f32 to vector<1x128xf32>
      %c0_15 = arith.constant 0 : index
      %c0_16 = arith.constant 0 : index
      %18 = vector.load %arg3[%c0_15, %c0_16] : memref<1x128xf32, #tpu.memory_space<vmem>>, vector<1x128xf32>
      tpu.vector_store %arg3[%c0_15, %c0_16], %17 {strides = array<i32>} : memref<1x128xf32, #tpu.memory_space<vmem>>, vector<1x128xf32>,
    } else {
    }
    %c0 = arith.constant 0 : index
    %c0_1 = arith.constant 0 : index
    %3 = vector.load %arg1[%c0, %c0_1] : memref<32x128xf32, #tpu.memory_space<vmem>>, vector<32x128xf32>
    %c0_2 = arith.constant 0 : index
    %c0_3 = arith.constant 0 : index
    %4 = vector.load %arg2[%c0_2, %c0_3] : memref<1x128xf32, #tpu.memory_space<vmem>>, vector<1x128xf32>
    %cst = arith.constant dense<0.000000e+00> : vector<128xf32>
    %5 = vector.multi_reduction <add>, %3, %cst [0] : vector<32x128xf32> to vector<128xf32>
    %6 = vector.shape_cast %5 : vector<128xf32> to vector<1x128xf32>
    %7 = arith.addf %4, %6 : vector<1x128xf32>
    %c0_4 = arith.constant 0 : index
    %c0_5 = arith.constant 0 : index
    %8 = vector.load %arg2[%c0_4, %c0_5] : memref<1x128xf32, #tpu.memory_space<vmem>>, vector<1x128xf32>
    tpu.vector_store %arg2[%c0_4, %c0_5], %7 {strides = array<i32>} : memref<1x128xf32, #tpu.memory_space<vmem>>, vector<1x128xf32>,
    %c0_6 = arith.constant 0 : index
    %c0_7 = arith.constant 0 : index
    %9 = vector.load %arg3[%c0_6, %c0_7] : memref<1x128xf32, #tpu.memory_space<vmem>>, vector<1x128xf32>
    %10 = arith.mulf %3, %3 : vector<32x128xf32>
    %cst_8 = arith.constant dense<0.000000e+00> : vector<128xf32>
    %11 = vector.multi_reduction <add>, %10, %cst_8 [0] : vector<32x128xf32> to vector<128xf32>
    %12 = vector.shape_cast %11 : vector<128xf32> to vector<1x128xf32>
    %13 = arith.addf %9, %12 : vector<1x128xf32>
    %c0_9 = arith.constant 0 : index
    %c0_10 = arith.constant 0 : index
    %14 = vector.load %arg3[%c0_9, %c0_10] : memref<1x128xf32, #tpu.memory_space<vmem>>, vector<1x128xf32>
    tpu.vector_store %arg3[%c0_9, %c0_10], %13 {strides = array<i32>} : memref<1x128xf32, #tpu.memory_space<vmem>>, vector<1x128xf32>,
    return
  }
  func.func @transform_0(%arg0: i32) -> (i32, i32) {
    %c0_i32 = arith.constant 0 : i32
    %c0_i32_0 = arith.constant 0 : i32
    return %arg0, %c0_i32 : i32, i32
  }
  func.func @transform_1(%arg0: i32) -> (i32, i32) {
    %c0_i32 = arith.constant 0 : i32
    %c0_i32_0 = arith.constant 0 : i32
    %c0_i32_1 = arith.constant 0 : i32
    return %c0_i32, %c0_i32_0 : i32, i32
  }
  func.func @transform_2(%arg0: i32) -> (i32, i32) {
    %c0_i32 = arith.constant 0 : i32
    %c0_i32_0 = arith.constant 0 : i32
    %c0_i32_1 = arith.constant 0 : i32
    return %c0_i32, %c0_i32_0 : i32, i32
  }
}

module attributes {stable_mosaic.version = 11 : i64} {
  func.func @_scale_shift_relu_kernel(%arg0: i32, %arg1: memref<32x128xf32, #tpu.memory_space<vmem>>, %arg2: memref<1x128xf32, #tpu.memory_space<vmem>>, %arg3: memref<1x128xf32, #tpu.memory_space<vmem>>, %arg4: memref<32x128xf32, #tpu.memory_space<vmem>>) attributes {dimension_semantics = [#tpu.dimension_semantics<parallel>], iteration_bounds = array<i64: 1>, scalar_prefetch = 0 : i64, scratch_operands = 0 : i64, tpu.core_type = #tpu.core_type<tc>, window_params = [{transform_indices = @transform_0, window_bounds = array<i64: 32, 128>}, {pipeline_mode = #tpu.pipeline_mode<synchronous>, transform_indices = @transform_1, window_bounds = array<i64: 1, 128>}, {pipeline_mode = #tpu.pipeline_mode<synchronous>, transform_indices = @transform_2, window_bounds = array<i64: 1, 128>}, {transform_indices = @transform_3, window_bounds = array<i64: 32, 128>}]} {
    %c0 = arith.constant 0 : index
    %c0_0 = arith.constant 0 : index
    %0 = vector.load %arg1[%c0, %c0_0] : memref<32x128xf32, #tpu.memory_space<vmem>>, vector<32x128xf32>
    %c0_1 = arith.constant 0 : index
    %c0_2 = arith.constant 0 : index
    %1 = vector.load %arg2[%c0_1, %c0_2] : memref<1x128xf32, #tpu.memory_space<vmem>>, vector<1x128xf32>
    %2 = vector.broadcast %1 : vector<1x128xf32> to vector<32x128xf32>
    %3 = arith.mulf %0, %2 : vector<32x128xf32>
    %c0_3 = arith.constant 0 : index
    %c0_4 = arith.constant 0 : index
    %4 = vector.load %arg3[%c0_3, %c0_4] : memref<1x128xf32, #tpu.memory_space<vmem>>, vector<1x128xf32>
    %5 = vector.broadcast %4 : vector<1x128xf32> to vector<32x128xf32>
    %6 = arith.addf %3, %5 : vector<32x128xf32>
    %cst = arith.constant 0.000000e+00 : f32
    %7 = vector.broadcast %cst : f32 to vector<32x128xf32>
    %8 = arith.maximumf %6, %7 : vector<32x128xf32>
    %c0_5 = arith.constant 0 : index
    %c0_6 = arith.constant 0 : index
    %9 = vector.load %arg4[%c0_5, %c0_6] : memref<32x128xf32, #tpu.memory_space<vmem>>, vector<32x128xf32>
    tpu.vector_store %arg4[%c0_5, %c0_6], %8 {strides = array<i32>} : memref<32x128xf32, #tpu.memory_space<vmem>>, vector<32x128xf32>,
    return
  }
  func.func @transform_0(%arg0: i32) -> (i32, i32) {
    %c0_i32 = arith.constant 0 : i32
    %c0_i32_0 = arith.constant 0 : i32
    return %arg0, %c0_i32 : i32, i32
  }
  func.func @transform_1(%arg0: i32) -> (i32, i32) {
    %c0_i32 = arith.constant 0 : i32
    %c0_i32_0 = arith.constant 0 : i32
    %c0_i32_1 = arith.constant 0 : i32
    return %c0_i32, %c0_i32_0 : i32, i32
  }
  func.func @transform_2(%arg0: i32) -> (i32, i32) {
    %c0_i32 = arith.constant 0 : i32
    %c0_i32_0 = arith.constant 0 : i32
    %c0_i32_1 = arith.constant 0 : i32
    return %c0_i32, %c0_i32_0 : i32, i32
  }
  func.func @transform_3(%arg0: i32) -> (i32, i32) {
    %c0_i32 = arith.constant 0 : i32
    %c0_i32_0 = arith.constant 0 : i32
    return %arg0, %c0_i32 : i32, i32
  }
}

module attributes {stable_mosaic.version = 11 : i64} {
  func.func @kernel(%arg0: i32, %arg1: i32, %arg2: i32, %arg3: memref<584x128xbf16, #tpu.memory_space<vmem>>, %arg4: memref<128x128xbf16, #tpu.memory_space<vmem>>, %arg5: memref<584x128xf32, #tpu.memory_space<vmem>>, %arg6: memref<584x128xf32, #tpu.memory_space<vmem>>) attributes {dimension_semantics = [#tpu.dimension_semantics<parallel>, #tpu.dimension_semantics<parallel>, #tpu.dimension_semantics<arbitrary>], iteration_bounds = array<i64: 1, 1, 1>, scalar_prefetch = 0 : i64, scratch_operands = 1 : i64, tpu.core_type = #tpu.core_type<tc>, window_params = [{transform_indices = @transform_0, window_bounds = array<i64: 584, 128>}, {transform_indices = @transform_1, window_bounds = array<i64: 128, 128>}, {transform_indices = @transform_2, window_bounds = array<i64: 584, 128>}]} {
    %c0_i32 = arith.constant 0 : i32
    %0 = arith.cmpi eq, %arg2, %c0_i32 : i32
    %1 = arith.extui %0 : i1 to i32
    %c0_i32_0 = arith.constant 0 : i32
    %2 = arith.cmpi ne, %1, %c0_i32_0 : i32
    scf.if %2 {
      %cst_10 = arith.constant 0.000000e+00 : f32
      %12 = vector.broadcast %cst_10 : f32 to vector<584x128xf32>
      %c0_11 = arith.constant 0 : index
      %c0_12 = arith.constant 0 : index
      %13 = vector.load %arg6[%c0_11, %c0_12] : memref<584x128xf32, #tpu.memory_space<vmem>>, vector<584x128xf32>
      tpu.vector_store %arg6[%c0_11, %c0_12], %12 {strides = array<i32>} : memref<584x128xf32, #tpu.memory_space<vmem>>, vector<584x128xf32>,
    } else {
    }
    %c0 = arith.constant 0 : index
    %c0_1 = arith.constant 0 : index
    %3 = vector.load %arg6[%c0, %c0_1] : memref<584x128xf32, #tpu.memory_space<vmem>>, vector<584x128xf32>
    %c0_2 = arith.constant 0 : index
    %c0_3 = arith.constant 0 : index
    %4 = vector.load %arg3[%c0_2, %c0_3] : memref<584x128xbf16, #tpu.memory_space<vmem>>, vector<584x128xbf16>
    %c0_4 = arith.constant 0 : index
    %c0_5 = arith.constant 0 : index
    %5 = vector.load %arg4[%c0_4, %c0_5] : memref<128x128xbf16, #tpu.memory_space<vmem>>, vector<128x128xbf16>
    %cst = arith.constant dense<0.000000e+00> : vector<584x128xf32>
    %6 = tpu.matmul %4, %5, %cst {dimension_numbers = #tpu.dot_dimension_numbers<[1], [0], [0], [1], [0, 0, 1, 1], [], []>} : vector<584x128xbf16>, vector<128x128xbf16>, vector<584x128xf32> -> vector<584x128xf32>
    %7 = arith.addf %3, %6 : vector<584x128xf32>
    %c0_6 = arith.constant 0 : index
    %c0_7 = arith.constant 0 : index
    %8 = vector.load %arg6[%c0_6, %c0_7] : memref<584x128xf32, #tpu.memory_space<vmem>>, vector<584x128xf32>
    tpu.vector_store %arg6[%c0_6, %c0_7], %7 {strides = array<i32>} : memref<584x128xf32, #tpu.memory_space<vmem>>, vector<584x128xf32>,
    %c0_i32_8 = arith.constant 0 : i32
    %9 = arith.cmpi eq, %arg2, %c0_i32_8 : i32
    %10 = arith.extui %9 : i1 to i32
    %c0_i32_9 = arith.constant 0 : i32
    %11 = arith.cmpi ne, %10, %c0_i32_9 : i32
    scf.if %11 {
      %c0_10 = arith.constant 0 : index
      %c0_11 = arith.constant 0 : index
      %12 = vector.load %arg6[%c0_10, %c0_11] : memref<584x128xf32, #tpu.memory_space<vmem>>, vector<584x128xf32>
      %13 = math.tanh %12 : vector<584x128xf32>
      %c0_12 = arith.constant 0 : index
      %c0_13 = arith.constant 0 : index
      %14 = vector.load %arg5[%c0_12, %c0_13] : memref<584x128xf32, #tpu.memory_space<vmem>>, vector<584x128xf32>
      tpu.vector_store %arg5[%c0_12, %c0_13], %13 {strides = array<i32>} : memref<584x128xf32, #tpu.memory_space<vmem>>, vector<584x128xf32>,
    } else {
    }
    return
  }
  func.func @transform_0(%arg0: i32, %arg1: i32, %arg2: i32) -> (i32, i32) {
    %c0_i32 = arith.constant 0 : i32
    return %arg0, %arg2 : i32, i32
  }
  func.func @transform_1(%arg0: i32, %arg1: i32, %arg2: i32) -> (i32, i32) {
    %c0_i32 = arith.constant 0 : i32
    return %arg2, %arg1 : i32, i32
  }
  func.func @transform_2(%arg0: i32, %arg1: i32, %arg2: i32) -> (i32, i32) {
    %c0_i32 = arith.constant 0 : i32
    return %arg0, %arg1 : i32, i32
  }
}

</mosaic_0001>

<bundles_post_ra>
// kernel: generator_forward.8
= control target key start
LH: loop header
LB: loop body
LE: loop exit
PB: predicated region body
PF: predicated region fallthrough
CT: control target
= control target key end

     0   :  { %8 = vsyncpa [#allocation4], 0  ;;  %s470_s12 = smov [#allocation3]   ;;  %s615_s0 = inlined_call_operand.vmem [shape: bf16[8,128], index: 0, kind: input, shape index: {}]   ;;  %s616_s1 = inlined_call_operand.vmem [shape: bf16[128,512], index: 1, kind: input, shape index: {}]   ;;  %s617_s2 = inlined_call_operand.hbm [shape: f32[1,512], index: 2, kind: input, shape index: {}]   ;;  %s618_s3 = inlined_call_operand.vmem [shape: f32[8,512], index: 3, kind: output, shape index: {}]  }
   0x1   :  { %s19_s13 = sshll.u32 %s470_s12, 4  ;;  %s446_s16 = scalar_lea.hbm %s617_s2, 64  ;;  %s20_s13 = int_to_ptr.vmem [resolvable:$true] %s19_s13 }
   0x2   :  { %p447_p0 = scmp.ne.s32.totalorder %s617_s2, %s446_s16  ;;  %p450_p1 = scmp.lt.u32.totalorder %s446_s16, %s617_s2 }
   0x4   :  { %p452_p2 = pnand %p450_p1, %p447_p0 }
   0x6   :  { %455 = shalt.err (!%p452_p2)
}
   0x7   :  { %s456_s21 = scalar_lea.vmem %s20_s13, 64  ;;  %p461_p4 = scmp.lt.s32.totalorder %s20_s13, %s20_s13 }
   0x8   :  { %p457_p3 = scmp.ne.s32.totalorder %s20_s13, %s456_s21  ;;  %p462_p5 = scmp.lt.s32.totalorder %s456_s21, %s456_s21 }
   0xa   :  { %p463_p6 = por %p462_p5, %p461_p4 }
   0xc   :  { %p464_p7 = pnand %p463_p6, %p457_p3 }
   0xe   :  { %467 = shalt.err (!%p464_p7)
}
   0xf   :  { %22 = dma.hbm_to_vmem [thread:$0]  %s617_s2, 64, %s20_s13, [#allocation4]  }
  0x10   :  { %468 = dma.done.wait [#allocation4], 64  }
  0x11   :  { %469 = vsyncadd [#allocation4], 4294967232  ;;  %v471_v0 = vmov 0   ;;  %v398_v1 = vld [vmem:[%s616_s1 + $0x4] ss:$16 sps:$4 sm:$0xff]   ;;  %v331_v34 = vlaneseq }
  0x12   :  { %264 = vmatprep.mubr.bf16.mxu0 %v471_v0  ;;  %305 = vmatprep.mubr.bf16.mxu1 %v471_v0  ;;  %v400_v2 = vld [vmem:[%s616_s1 + $0xc] ss:$16 sps:$4 sm:$0xff]   ;;  %v402_v3 = vld [vmem:[%s616_s1] ss:$16 sps:$4 sm:$0xff]   ;;  %v403_v4 = vld [vmem:[%s616_s1 + $0x8] ss:$16 sps:$4 sm:$0xff]  }
  0x13   :  { %232 = vmatprep.subr.bf16.mxu0 %v398_v1  ;;  %273 = vmatprep.subr.bf16.mxu1 %v400_v2  ;;  %v404_v5 = vld [vmem:[%s616_s1 + $0x24] ss:$16 sps:$4 sm:$0xff]   ;;  %v406_v6 = vld [vmem:[%s616_s1 + $0x2c] ss:$16 sps:$4 sm:$0xff]   ;;  %v408_v7 = vld [vmem:[%s616_s1 + $0x20] ss:$16 sps:$4 sm:$0xff]  }
  0x14   :  { %233 = vmatpush1.bf16.msra.mxu0 %v402_v3  ;;  %274 = vmatpush1.bf16.msra.mxu1 %v403_v4  ;;  %v409_v8 = vld [vmem:[%s616_s1 + $0x28] ss:$16 sps:$4 sm:$0xff]   ;;  %v410_v9 = vld [vmem:[%s616_s1 + $0x44] ss:$16 sps:$4 sm:$0xff]   ;;  %v412_v10 = vld [vmem:[%s616_s1 + $0x4c] ss:$16 sps:$4 sm:$0xff]  }
  0x15   :  { %234 = vmatprep.subr.bf16.mxu0 %v404_v5  ;;  %275 = vmatprep.subr.bf16.mxu1 %v406_v6  ;;  %v414_v11 = vld [vmem:[%s616_s1 + $0x40] ss:$16 sps:$4 sm:$0xff]   ;;  %v415_v12 = vld [vmem:[%s616_s1 + $0x48] ss:$16 sps:$4 sm:$0xff]   ;;  %v416_v13 = vld [vmem:[%s616_s1 + $0x64] ss:$16 sps:$4 sm:$0xff]  }
  0x16   :  { %v418_v14 = vld [vmem:[%s616_s1 + $0x6c] ss:$16 sps:$4 sm:$0xff]   ;;  %v420_v15 = vld [vmem:[%s616_s1 + $0x60] ss:$16 sps:$4 sm:$0xff]   ;;  %v421_v16 = vld [vmem:[%s616_s1 + $0x68] ss:$16 sps:$4 sm:$0xff]  }
  0x17   :  { %v422_v17 = vld [vmem:[%s616_s1 + $0x84] ss:$16 sps:$4 sm:$0xff]   ;;  %v424_v18 = vld [vmem:[%s616_s1 + $0x8c] ss:$16 sps:$4 sm:$0xff]   ;;  %v426_v19 = vld [vmem:[%s616_s1 + $0x80] ss:$16 sps:$4 sm:$0xff]  }
  0x18   :  { %235 = vmatpush1.bf16.msra.mxu0 %v408_v7  ;;  %276 = vmatpush1.bf16.msra.mxu1 %v409_v8  ;;  %v427_v20 = vld [vmem:[%s616_s1 + $0x88] ss:$16 sps:$4 sm:$0xff]   ;;  %v428_v21 = vld [vmem:[%s616_s1 + $0xa4] ss:$16 sps:$4 sm:$0xff]   ;;  %v430_v22 = vld [vmem:[%s616_s1 + $0xac] ss:$16 sps:$4 sm:$0xff]  }
  0x19   :  { %236 = vmatprep.subr.bf16.mxu0 %v410_v9  ;;  %277 = vmatprep.subr.bf16.mxu1 %v412_v10  ;;  %v432_v23 = vld [vmem:[%s616_s1 + $0xa0] ss:$16 sps:$4 sm:$0xff]   ;;  %v433_v24 = vld [vmem:[%s616_s1 + $0xa8] ss:$16 sps:$4 sm:$0xff]   ;;  %v434_v25 = vld [vmem:[%s616_s1 + $0xc4] ss:$16 sps:$4 sm:$0xff]  }
  0x1a   :  { %v436_v26 = vld [vmem:[%s616_s1 + $0xcc] ss:$16 sps:$4 sm:$0xff]   ;;  %v438_v27 = vld [vmem:[%s616_s1 + $0xc0] ss:$16 sps:$4 sm:$0xff]   ;;  %v439_v28 = vld [vmem:[%s616_s1 + $0xc8] ss:$16 sps:$4 sm:$0xff]  }
  0x1b   :  { %v440_v29 = vld [vmem:[%s616_s1 + $0xe4] ss:$16 sps:$4 sm:$0xff]   ;;  %v442_v30 = vld [vmem:[%s616_s1 + $0xec] ss:$16 sps:$4 sm:$0xff]   ;;  %v444_v31 = vld [vmem:[%s616_s1 + $0xe0] ss:$16 sps:$4 sm:$0xff]  }
  0x1c   :  { %237 = vmatpush1.bf16.msra.mxu0 %v414_v11  ;;  %278 = vmatpush1.bf16.msra.mxu1 %v415_v12  ;;  %v445_v32 = vld [vmem:[%s616_s1 + $0xe8] ss:$16 sps:$4 sm:$0xff]   ;;  %v39_v33 = vld [vmem:[%s615_s0] sm:$0xf]  ;;  %v332_v35 = vshrl.u32 %v331_v34, 7 }
  0x1d   :  { %238 = vmatprep.subr.bf16.mxu0 %v416_v13  ;;  %279 = vmatprep.subr.bf16.mxu1 %v418_v14  ;;  %v329_v38 = vld [vmem:[#allocation3] sm:$0xf] }
  0x1e   :  { %v333_v36 = vsub.s32 0, %v332_v35  ;;  %v341_v37 = vsub.s32 2, %v332_v35  ;;  %v337_v39 = vsub.s32 1, %v332_v35  ;;  %v345_v40 = vsub.s32 3, %v332_v35 }
  0x20   :  { %239 = vmatpush1.bf16.msra.mxu0 %v420_v15  ;;  %280 = vmatpush1.bf16.msra.mxu1 %v421_v16  ;;  %v334_v41 = vrot.slane %v329_v38, %v333_v36  ;;  %v342_v42 = vrot.slane %v329_v38, %v341_v37  ;;  %v338_v43 = vrot.slane %v329_v38, %v337_v39 }
  0x21   :  { %240 = vmatprep.subr.bf16.mxu0 %v422_v17  ;;  %281 = vmatprep.subr.bf16.mxu1 %v424_v18  ;;  %v346_v44 = vrot.slane %v329_v38, %v345_v40 }
  0x24   :  { %241 = vmatpush1.bf16.msra.mxu0 %v426_v19  ;;  %282 = vmatpush1.bf16.msra.mxu1 %v427_v20 }
  0x25   :  { %242 = vmatprep.subr.bf16.mxu0 %v428_v21  ;;  %283 = vmatprep.subr.bf16.mxu1 %v430_v22 }
  0x28   :  { %243 = vmatpush1.bf16.msra.mxu0 %v432_v23  ;;  %284 = vmatpush1.bf16.msra.mxu1 %v433_v24 }
  0x29   :  { %244 = vmatprep.subr.bf16.mxu0 %v434_v25  ;;  %285 = vmatprep.subr.bf16.mxu1 %v436_v26 }
  0x2c   :  { %245 = vmatpush1.bf16.msra.mxu0 %v438_v27  ;;  %286 = vmatpush1.bf16.msra.mxu1 %v439_v28 }
  0x2d   :  { %246 = vmatprep.subr.bf16.mxu0 %v440_v29  ;;  %287 = vmatprep.subr.bf16.mxu1 %v442_v30 }
  0x30   :  { %247 = vmatpush1.bf16.msra.mxu0 %v444_v31  ;;  %288 = vmatpush1.bf16.msra.mxu1 %v445_v32 }
  0x33   :  { %265 = vmatmul.mubr.bf16.vlgmr.msra.gmra.mrb[0].mxu0 %v39_v33  ;;  %306 = vmatmul.mubr.bf16.vlgmr.msra.gmra.mrb[0].mxu1 %v39_v33 }
 0x106   :  { %v266_v45 = vpop.f32.mrb[0].mxu0  ;;  %v307_v46 = vpop.f32.mrb[0].mxu1 }
 0x107   :  { %v351_v47 = vadd.f32 %v334_v41, %v266_v45  ;;  %v353_v48 = vadd.f32 %v342_v42, %v307_v46  ;;  %v268_v49 = vpop.f32.mrb[1].mxu0  ;;  %v309_v50 = vpop.f32.mrb[1].mxu1 }
 0x108   :  { %v352_v51 = vadd.f32 %v338_v43, %v268_v49  ;;  %v354_v52 = vadd.f32 %v346_v44, %v309_v50  ;;  %v270_v53 = vpop.f32.mrb[2].mxu0  ;;  %v311_v54 = vpop.f32.mrb[2].mxu1 }
 0x109   :  { %355 = vst [vmem:[%s618_s3] sm:$0xff] %v351_v47  ;;  %357 = vst [vmem:[%s618_s3 + $0x10] sm:$0xff] %v353_v48  ;;  %v271_v55 = vpop.f32.mrb[3].mxu0  ;;  %v312_v56 = vpop.f32.mrb[3].mxu1 }
 0x10a   :  { %356 = vst [vmem:[%s618_s3 + $0x8] sm:$0xff] %v352_v51  ;;  %358 = vst [vmem:[%s618_s3 + $0x18] sm:$0xff] %v354_v52 }
 0x10b   :  { %363 = vsyncpa [#allocation4], 1 }

// kernel: generator_forward.9
= control target key start
LH: loop header
LB: loop body
LE: loop exit
PB: predicated region body
PF: predicated region fallthrough
CT: control target
= control target key end

     0   :  { %s370_s1 = inlined_call_operand.vmem [shape: bf16[128,128], index: 1, kind: input, shape index: {}]   ;;  %s371_s0 = inlined_call_operand.vmem [shape: bf16[56,128], index: 0, kind: input, shape index: {}]   ;;  %s372_s2 = inlined_call_operand.vmem [shape: f32[56,128], index: 2, kind: output, shape index: {}]  }
   0x1   :  { %v286_v0 = vld [vmem:[%s370_s1] sm:$0xff]   ;;  %v287_v1 = vld [vmem:[%s370_s1 + $0x8] sm:$0xff]   ;;  %v288_v2 = vld [vmem:[%s370_s1 + $0x10] sm:$0xff]  }
   0x2   :  { %246 = vmatprep.subr.bf16.mxu0 %v286_v0  ;;  %270 = vmatprep.subr.bf16.mxu1 %v286_v0  ;;  %v289_v3 = vld [vmem:[%s370_s1 + $0x18] sm:$0xff]   ;;  %v294_v4 = vld [vmem:[%s371_s0] sm:$0xff]   ;;  %v295_v5 = vld [vmem:[%s371_s0 + $0x10] sm:$0xff]  }
   0x3   :  { %247 = vmatpush3.bf16.msra.mxu0 %v286_v0  ;;  %278 = vmatpush3.bf16.msra.mxu1 %v286_v0  ;;  %v290_v6 = vld [vmem:[%s370_s1 + $0x20] sm:$0xff]   ;;  %v291_v7 = vld [vmem:[%s370_s1 + $0x28] sm:$0xff]   ;;  %v292_v8 = vld [vmem:[%s370_s1 + $0x30] sm:$0xff]  }
   0x4   :  { %248 = vmatprep.subr.bf16.mxu0 %v287_v1  ;;  %271 = vmatprep.subr.bf16.mxu1 %v287_v1  ;;  %v293_v9 = vld [vmem:[%s370_s1 + $0x38] sm:$0xff]   ;;  %v296_v10 = vld [vmem:[%s371_s0 + $0x8] sm:$0xff]  }
   0x5   :  { %262 = vmatprep.mubr.bf16.mxu0 %v294_v4  ;;  %266 = vmatprep.mubr.bf16.mxu1 %v295_v5  ;;  %v297_v11 = vld [vmem:[%s371_s0 + $0x18] ss:$0 sps:$4 sm:$0xff]  }
   0x7   :  { %249 = vmatpush3.bf16.msra.mxu0 %v287_v1  ;;  %279 = vmatpush3.bf16.msra.mxu1 %v287_v1 }
   0x8   :  { %250 = vmatprep.subr.bf16.mxu0 %v288_v2  ;;  %272 = vmatprep.subr.bf16.mxu1 %v288_v2 }
   0xb   :  { %251 = vmatpush3.bf16.msra.mxu0 %v288_v2  ;;  %280 = vmatpush3.bf16.msra.mxu1 %v288_v2 }
   0xc   :  { %252 = vmatprep.subr.bf16.mxu0 %v289_v3  ;;  %273 = vmatprep.subr.bf16.mxu1 %v289_v3 }
   0xf   :  { %253 = vmatpush3.bf16.msra.mxu0 %v289_v3  ;;  %281 = vmatpush3.bf16.msra.mxu1 %v289_v3 }
  0x10   :  { %254 = vmatprep.subr.bf16.mxu0 %v290_v6  ;;  %274 = vmatprep.subr.bf16.mxu1 %v290_v6 }
  0x13   :  { %255 = vmatpush3.bf16.msra.mxu0 %v290_v6  ;;  %282 = vmatpush3.bf16.msra.mxu1 %v290_v6 }
  0x14   :  { %256 = vmatprep.subr.bf16.mxu0 %v291_v7  ;;  %275 = vmatprep.subr.bf16.mxu1 %v291_v7 }
  0x17   :  { %257 = vmatpush3.bf16.msra.mxu0 %v291_v7  ;;  %283 = vmatpush3.bf16.msra.mxu1 %v291_v7 }
  0x18   :  { %258 = vmatprep.subr.bf16.mxu0 %v292_v8  ;;  %276 = vmatprep.subr.bf16.mxu1 %v292_v8 }
  0x1b   :  { %259 = vmatpush3.bf16.msra.mxu0 %v292_v8  ;;  %284 = vmatpush3.bf16.msra.mxu1 %v292_v8 }
  0x1c   :  { %260 = vmatprep.subr.bf16.mxu0 %v293_v9  ;;  %277 = vmatprep.subr.bf16.mxu1 %v293_v9 }
  0x1f   :  { %261 = vmatpush3.bf16.msra.mxu0 %v293_v9  ;;  %285 = vmatpush3.bf16.msra.mxu1 %v293_v9 }
  0x22   :  { %263 = vmatmul.mubr.bf16.vlgmr.msra.gmra.mrb[0].mxu0 %v296_v10  ;;  %267 = vmatmul.mubr.bf16.vlgmr.msra.gmra.mrb[0].mxu1 %v297_v11 }
  0xf5   :  { %v264_v12 = vpop.f32.mrb[0].mxu0  ;;  %v268_v13 = vpop.f32.mrb[0].mxu1 }
  0xf6   :  { %213 = vst [vmem:[%s372_s2 + $0x10] sm:$0xff] %v264_v12  ;;  %217 = vst [vmem:[%s372_s2 + $0x30] sm:$0xff] %v268_v13  ;;  %v157_v14 = vpop.f32.mrb[1].mxu0  ;;  %v173_v15 = vpop.f32.mrb[1].mxu1 }
  0xf7   :  { %211 = vst [vmem:[%s372_s2] sm:$0xff] %v157_v14  ;;  %215 = vst [vmem:[%s372_s2 + $0x20] sm:$0xff] %v173_v15  ;;  %v265_v16 = vpop.f32.mrb[2].mxu0  ;;  %v269_v17 = vpop.f32.mrb[2].mxu1 }
  0xf8   :  { %214 = vst [vmem:[%s372_s2 + $0x18] sm:$0xff] %v265_v16  ;;  %v160_v18 = vpop.f32.mrb[3].mxu0  ;;  %v176_v19 = vpop.f32.mrb[3].mxu1 }
  0xf9   :  { %212 = vst [vmem:[%s372_s2 + $0x8] sm:$0xff] %v160_v18  ;;  %216 = vst [vmem:[%s372_s2 + $0x28] sm:$0xff] %v176_v19 }

// kernel: squeeze.4
= control target key start
LH: loop header
LB: loop body
LE: loop exit
PB: predicated region body
PF: predicated region fallthrough
CT: control target
= control target key end

     0   :  { %s66_s8 = smov 80   ;;  %vm7_vm0 = vcmask 130048   ;;  %s67_s11 = smov 96   ;;  %s117_s0 = inlined_call_operand.vmem [shape: f32[128], index: 0, kind: input, shape index: {}]   ;;  %s118_s1 = inlined_call_operand.vmem [shape: f32[8,16], index: 1, kind: output, shape index: {}]  }
   0x1   :  { %v4_v0 = vld [vmem:[%s117_s0] sm:$0x1]  ;;  %s65_s0 = smov 112   ;;  %s68_s12 = smov 64  }
   0x2   :  { %5 = vst [vmem:[#allocation0] sm:$0x1] %v4_v0  ;;  %s69_s13 = smov 48   ;;  %s70_s14 = smov 32  }
   0x3   :  { %s71_s15 = smov 16  }
   0x9   :  { %v9_v1 = vld [vmem:[#allocation0] sm:$0x1]  }
   0xa   :  { %v21_v2 = vld [vmem:[#allocation0] sm:$0x1]   ;;  %10 = vrot.lane.b32.xlu0 %v9_v1, %s65_s0 }
   0xb   :  { %22 = vrot.lane.b32.xlu1 %v21_v2, %s66_s8  ;;  %v15_v3 = vld [vmem:[#allocation0] sm:$0x1]  }
   0xc   :  { %v27_v4 = vld [vmem:[#allocation0] sm:$0x1]  }
   0xd   :  { %v6_v5 = vld [vmem:[#allocation0] sm:$0x1]  }
   0xe   :  { %8 = vst.msk [vmem:[%s118_s1] sm:$0x1] %vm7_vm0, %v6_v5   ;;  %16 = vrot.lane.b32.xlu0 %v15_v3, %s67_s11  ;;  %v33_v6 = vld [vmem:[#allocation0] sm:$0x1]  }
   0xf   :  { %28 = vrot.lane.b32.xlu1 %v27_v4, %s68_s12  ;;  %v39_v7 = vld [vmem:[#allocation0] sm:$0x1]  }
  0x10   :  { %v45_v8 = vld [vmem:[#allocation0] sm:$0x1]  }
  0x12   :  { %34 = vrot.lane.b32.xlu0 %v33_v6, %s69_s13 }
  0x13   :  { %40 = vrot.lane.b32.xlu1 %v39_v7, %s70_s14 }
  0x16   :  { %46 = vrot.lane.b32.xlu0 %v45_v8, %s71_s15 }
  0x7c   :  { %v11_v9 = vpop.permute.xlu0 %10  }
  0x7d   :  { %v23_v10 = vpop.permute.xlu1 %22   ;;  %51 = vst.msk [vmem:[%s118_s1 + $0x1] sm:$0x1] %vm7_vm0, %v11_v9  }
  0x7e   :  { %53 = vst.msk [vmem:[%s118_s1 + $0x3] sm:$0x1] %vm7_vm0, %v23_v10  }
  0x80   :  { %v17_v11 = vpop.permute.xlu0 %16  }
  0x81   :  { %v29_v12 = vpop.permute.xlu1 %28   ;;  %52 = vst.msk [vmem:[%s118_s1 + $0x2] sm:$0x1] %vm7_vm0, %v17_v11  }
  0x82   :  { %54 = vst.msk [vmem:[%s118_s1 + $0x4] sm:$0x1] %vm7_vm0, %v29_v12  }
  0x84   :  { %v35_v13 = vpop.permute.xlu0 %34  }
  0x85   :  { %v41_v14 = vpop.permute.xlu1 %40   ;;  %55 = vst.msk [vmem:[%s118_s1 + $0x5] sm:$0x1] %vm7_vm0, %v35_v13  }
  0x86   :  { %56 = vst.msk [vmem:[%s118_s1 + $0x6] sm:$0x1] %vm7_vm0, %v41_v14  }
  0x88   :  { %v47_v15 = vpop.permute.xlu0 %46  }
  0x89   :  { %57 = vst.msk [vmem:[%s118_s1 + $0x7] sm:$0x1] %vm7_vm0, %v47_v15  }

// kernel: tile.28
= control target key start
LH: loop header
LB: loop body
LE: loop exit
PB: predicated region body
PF: predicated region fallthrough
CT: control target
= control target key end

     0   :  { %s22_s0 = inlined_call_operand.vmem [shape: f32[16], index: 0, kind: input, shape index: {}]   ;;  %s23_s1 = inlined_call_operand.vmem [shape: f32[8,16], index: 1, kind: output, shape index: {}]  }
   0x1   :  { %v4_v0 = vld [vmem:[%s22_s0] ss:$0 sm:$0xff] }
   0x2   :  { %5 = vst [vmem:[%s23_s1] sm:$0xff] %v4_v0 }

// kernel: tile.29
= control target key start
LH: loop header
LB: loop body
LE: loop exit
PB: predicated region body
PF: predicated region fallthrough
CT: control target
= control target key end

     0   :  { %s67_s10 = smov 112   ;;  %s68_s11 = smov 80   ;;  %vm3_vm0 = vcmask 130048   ;;  %vm9_vm1 = vcmask 1048448   ;;  %vm15_vm2 = vcmask 917248   ;;  %vm21_vm3 = vcmask 786048   ;;  %s111_s0 = inlined_call_operand.vmem [shape: f32[8,16], index: 0, kind: input, shape index: {}]   ;;  %s112_s1 = inlined_call_operand.vmem [shape: f32[1,128], index: 1, kind: output, shape index: {}]  }
   0x1   :  { %v53_v0 = vld [vmem:[%s111_s0 + $0x7] sm:$0x1]   ;;  %v55_v1 = vld [vmem:[%s111_s0 + $0x5] sm:$0x1]   ;;  %v54_v2 = vld [vmem:[%s111_s0 + $0x6] sm:$0x1]  }
   0x2   :  { %7 = vrot.lane.b32.xlu0 %v53_v0, %s67_s10  ;;  %19 = vrot.lane.b32.xlu1 %v55_v1, %s68_s11  ;;  %v56_v3 = vld [vmem:[%s111_s0 + $0x4] sm:$0x1]   ;;  %v2_v4 = vld [vmem:[%s111_s0] sm:$0x1]   ;;  %s69_s18 = smov 96   ;;  %s70_s19 = smov 64  }
   0x3   :  { %4 = vst.msk [vmem:[#allocation0] sm:$0x1] %vm3_vm0, %v2_v4   ;;  %v57_v5 = vld [vmem:[%s111_s0 + $0x3] sm:$0x1]   ;;  %v58_v6 = vld [vmem:[%s111_s0 + $0x2] sm:$0x1]  }
   0x4   :  { %s71_s24 = smov 48   ;;  %s72_s25 = smov 32   ;;  %v59_v7 = vld [vmem:[%s111_s0 + $0x1] sm:$0x1]   ;;  %vm27_vm4 = vcmask 654848   ;;  %vm33_vm5 = vcmask 523648  }
   0x5   :  { %s73_s0 = smov 16   ;;  %vm39_vm6 = vcmask 392448   ;;  %vm45_vm7 = vcmask 261248  }
   0x6   :  { %13 = vrot.lane.b32.xlu0 %v54_v2, %s69_s18  ;;  %25 = vrot.lane.b32.xlu1 %v56_v3, %s70_s19 }
   0xa   :  { %31 = vrot.lane.b32.xlu0 %v57_v5, %s71_s24  ;;  %37 = vrot.lane.b32.xlu1 %v58_v6, %s72_s25 }
   0xe   :  { %43 = vrot.lane.b32.xlu0 %v59_v7, %s73_s0 }
  0x74   :  { %v8_v8 = vpop.permute.xlu0 %7   ;;  %v20_v9 = vpop.permute.xlu1 %19  }
  0x75   :  { %10 = vst.msk [vmem:[#allocation0] sm:$0x1] %vm9_vm1, %v8_v8  }
  0x78   :  { %v14_v10 = vpop.permute.xlu0 %13   ;;  %v26_v11 = vpop.permute.xlu1 %25  }
  0x79   :  { %16 = vst.msk [vmem:[#allocation0] sm:$0x1] %vm15_vm2, %v14_v10  }
  0x7a   :  { %22 = vst.msk [vmem:[#allocation0] sm:$0x1] %vm21_vm3, %v20_v9  }
  0x7b   :  { %28 = vst.msk [vmem:[#allocation0] sm:$0x1] %vm27_vm4, %v26_v11  }
  0x7c   :  { %v32_v12 = vpop.permute.xlu0 %31   ;;  %v38_v13 = vpop.permute.xlu1 %37  }
  0x7d   :  { %34 = vst.msk [vmem:[#allocation0] sm:$0x1] %vm33_vm5, %v32_v12  }
  0x7e   :  { %40 = vst.msk [vmem:[#allocation0] sm:$0x1] %vm39_vm6, %v38_v13  }
  0x80   :  { %v44_v14 = vpop.permute.xlu0 %43  }
  0x81   :  { %46 = vst.msk [vmem:[#allocation0] sm:$0x1] %vm45_vm7, %v44_v14  }
  0x88   :  { %v50_v15 = vld [vmem:[#allocation0] sm:$0x1] }
  0x89   :  { %52 = vst [vmem:[%s112_s1] sm:$0x1] %v50_v15 }

// kernel: generator_forward.10
= control target key start
LH: loop header
LB: loop body
LE: loop exit
PB: predicated region body
PF: predicated region fallthrough
CT: control target
= control target key end

     0   :  { %v49_v0 = vmov 0.0   ;;  %s89_s1 = inlined_call_operand.vmem [shape: f32[1,128], index: 1, kind: output, shape index: {0}]   ;;  %s90_s2 = inlined_call_operand.vmem [shape: f32[1,128], index: 2, kind: output, shape index: {1}]   ;;  %s91_s0 = inlined_call_operand.vmem [shape: f32[16,128], index: 0, kind: input, shape index: {}]  }
   0x1   :  { %14 = vst [vmem:[%s89_s1] sm:$0x1] %v49_v0  ;;  %15 = vst [vmem:[%s90_s2] sm:$0x1] %v49_v0  ;;  %v16_v1 = vld [vmem:[%s91_s0] sm:$0xff]  ;;  %v17_v2 = vld [vmem:[%s91_s0 + $0x8] sm:$0xff] }
   0x2   :  { %v19_v3 = vadd.f32 %v17_v2, %v16_v1  ;;  %v29_v4 = vmul.f32 %v16_v1, %v16_v1  ;;  %v30_v5 = vmul.f32 %v17_v2, %v17_v2 }
   0x4   :  { %v20_v6 = vrot.slane %v19_v3, 4  ;;  %v31_v7 = vadd.f32 %v30_v5, %v29_v4 }
   0x6   :  { %v21_v8 = vadd.f32 %v20_v6, %v19_v3  ;;  %v32_v9 = vrot.slane %v31_v7, 4 }
   0x8   :  { %v22_v10 = vrot.slane %v21_v8, 2  ;;  %v33_v11 = vadd.f32 %v32_v9, %v31_v7  ;;  %v18_v16 = vld [vmem:[%s89_s1] sm:$0x1] }
   0x9   :  { %v28_v19 = vld [vmem:[%s90_s2] sm:$0x1] }
   0xa   :  { %v23_v12 = vadd.f32 %v22_v10, %v21_v8  ;;  %v34_v13 = vrot.slane %v33_v11, 2 }
   0xc   :  { %v24_v14 = vrot.slane %v23_v12, 1  ;;  %v35_v15 = vadd.f32 %v34_v13, %v33_v11 }
   0xe   :  { %v25_v17 = vadd.f32 %v24_v14, %v23_v12  ;;  %v36_v18 = vrot.slane %v35_v15, 1 }
  0x10   :  { %v26_v20 = vadd.f32 %v25_v17, %v18_v16  ;;  %v37_v21 = vadd.f32 %v36_v18, %v35_v15 }
  0x12   :  { %27 = vst [vmem:[%s89_s1] sm:$0x1] %v26_v20  ;;  %v38_v22 = vadd.f32 %v37_v21, %v28_v19 }
  0x14   :  { %39 = vst [vmem:[%s90_s2] sm:$0x1] %v38_v22 }

// kernel: generator_forward.11
= control target key start
LH: loop header
LB: loop body
LE: loop exit
PB: predicated region body
PF: predicated region fallthrough
CT: control target
= control target key end

     0   :  { %s82_s0 = inlined_call_operand.vmem [shape: f32[16,128], index: 0, kind: input, shape index: {}]   ;;  %s83_s1 = inlined_call_operand.vmem [shape: f32[1,128], index: 1, kind: input, shape index: {}]   ;;  %s84_s2 = inlined_call_operand.vmem [shape: f32[1,128], index: 2, kind: input, shape index: {}]   ;;  %s85_s3 = inlined_call_operand.vmem [shape: f32[16,128], index: 3, kind: output, shape index: {}]  }
   0x1   :  { %v14_v0 = vld [vmem:[%s82_s0] sm:$0xff]  ;;  %v15_v4 = vld [vmem:[%s82_s0 + $0x8] sm:$0xff] }
   0x2   :  { %v42_v1 = vld [vmem:[%s83_s1] ss:$0 sm:$0xff] }
   0x3   :  { %v43_v2 = vld [vmem:[%s84_s2] ss:$0 sm:$0xff]  ;;  %v23_v3 = vmul.f32 %v42_v1, %v14_v0  ;;  %v24_v5 = vmul.f32 %v42_v1, %v15_v4 }
   0x5   :  { %v32_v6 = vadd.f32 %v43_v2, %v23_v3  ;;  %v33_v7 = vadd.f32 %v43_v2, %v24_v5 }
   0x7   :  { %v34_v8 = vmax.f32 %v32_v6, 0.0  ;;  %v35_v9 = vmax.f32 %v33_v7, 0.0 }
   0x9   :  { %36 = vst [vmem:[%s85_s3] sm:$0xff] %v34_v8  ;;  %37 = vst [vmem:[%s85_s3 + $0x8] sm:$0xff] %v35_v9 }

// kernel: generator_forward.12
= control target key start
LH: loop header
LB: loop body
LE: loop exit
PB: predicated region body
PF: predicated region fallthrough
CT: control target
= control target key end

     0   :  { %v553_v0 = vmov 0.0   ;;  %vm554_vm0 = vmmov 0   ;;  %s728_s1 = inlined_call_operand.vmem [shape: bf16[128,128], index: 1, kind: input, shape index: {}]   ;;  %s729_s0 = inlined_call_operand.vmem [shape: bf16[168,128], index: 0, kind: input, shape index: {}]   ;;  %s730_s2 = inlined_call_operand.vmem [shape: f32[168,128], index: 2, kind: output, shape index: {}]  }
   0x1   :  { %456 = vmatprep.subr.bf16.mxu0 %v553_v0  ;;  %v534_v1 = vld [vmem:[%s728_s1] sm:$0xff]   ;;  %516 = vmatprep.subr.bf16.mxu1 %v553_v0  ;;  %v535_v2 = vld [vmem:[%s728_s1 + $0x8] sm:$0xff]   ;;  %v536_v3 = vld [vmem:[%s728_s1 + $0x10] sm:$0xff]  }
   0x2   :  { %472 = vmatprep.mubr.msk.bf16.mxu0 %vm554_vm0, %v553_v0  ;;  %496 = vmatprep.mubr.msk.bf16.mxu1 %vm554_vm0, %v553_v0  ;;  %v537_v4 = vld [vmem:[%s728_s1 + $0x18] sm:$0xff]   ;;  %v538_v5 = vld [vmem:[%s728_s1 + $0x20] sm:$0xff]   ;;  %v539_v6 = vld [vmem:[%s728_s1 + $0x28] sm:$0xff]  }
   0x3   :  { %457 = vmatpush3.bf16.msra.mxu0 %v534_v1  ;;  %524 = vmatpush3.bf16.msra.mxu1 %v534_v1  ;;  %v540_v7 = vld [vmem:[%s728_s1 + $0x30] sm:$0xff]   ;;  %v541_v8 = vld [vmem:[%s728_s1 + $0x38] sm:$0xff]   ;;  %v542_v9 = vld [vmem:[%s729_s0] sm:$0xff]  }
   0x4   :  { %458 = vmatprep.subr.bf16.mxu0 %v553_v0  ;;  %517 = vmatprep.subr.bf16.mxu1 %v553_v0  ;;  %v543_v10 = vld [vmem:[%s729_s0 + $0x30] sm:$0xff]   ;;  %v544_v11 = vld [vmem:[%s729_s0 + $0x8] sm:$0xff]   ;;  %v545_v12 = vld [vmem:[%s729_s0 + $0x38] sm:$0xff]  }
   0x5   :  { %v546_v13 = vld [vmem:[%s729_s0 + $0x10] sm:$0xff]   ;;  %v547_v14 = vld [vmem:[%s729_s0 + $0x40] sm:$0xff]   ;;  %v548_v15 = vld [vmem:[%s729_s0 + $0x18] sm:$0xff]  }
   0x6   :  { %v549_v16 = vld [vmem:[%s729_s0 + $0x48] sm:$0xff]   ;;  %v550_v17 = vld [vmem:[%s729_s0 + $0x20] sm:$0xff]   ;;  %v551_v18 = vld [vmem:[%s729_s0 + $0x50] ss:$0 sps:$4 sm:$0xff]  }
   0x7   :  { %459 = vmatpush3.bf16.msra.mxu0 %v535_v2  ;;  %525 = vmatpush3.bf16.msra.mxu1 %v535_v2  ;;  %v552_v19 = vld [vmem:[%s729_s0 + $0x28] sm:$0xff]  }
   0x8   :  { %460 = vmatprep.subr.bf16.mxu0 %v553_v0  ;;  %518 = vmatprep.subr.bf16.mxu1 %v553_v0 }
   0xb   :  { %461 = vmatpush3.bf16.msra.mxu0 %v536_v3  ;;  %526 = vmatpush3.bf16.msra.mxu1 %v536_v3 }
   0xc   :  { %462 = vmatprep.subr.bf16.mxu0 %v553_v0  ;;  %519 = vmatprep.subr.bf16.mxu1 %v553_v0 }
   0xf   :  { %463 = vmatpush3.bf16.msra.mxu0 %v537_v4  ;;  %527 = vmatpush3.bf16.msra.mxu1 %v537_v4 }
  0x10   :  { %464 = vmatprep.subr.bf16.mxu0 %v553_v0  ;;  %520 = vmatprep.subr.bf16.mxu1 %v553_v0 }
  0x13   :  { %465 = vmatpush3.bf16.msra.mxu0 %v538_v5  ;;  %528 = vmatpush3.bf16.msra.mxu1 %v538_v5 }
  0x14   :  { %466 = vmatprep.subr.bf16.mxu0 %v553_v0  ;;  %521 = vmatprep.subr.bf16.mxu1 %v553_v0 }
  0x17   :  { %467 = vmatpush3.bf16.msra.mxu0 %v539_v6  ;;  %529 = vmatpush3.bf16.msra.mxu1 %v539_v6 }
  0x18   :  { %468 = vmatprep.subr.bf16.mxu0 %v553_v0  ;;  %522 = vmatprep.subr.bf16.mxu1 %v553_v0 }
  0x1b   :  { %469 = vmatpush3.bf16.msra.mxu0 %v540_v7  ;;  %530 = vmatpush3.bf16.msra.mxu1 %v540_v7 }
  0x1c   :  { %470 = vmatprep.subr.bf16.mxu0 %v553_v0  ;;  %523 = vmatprep.subr.bf16.mxu1 %v553_v0 }
  0x1f   :  { %471 = vmatpush3.bf16.msra.mxu0 %v541_v8  ;;  %531 = vmatpush3.bf16.msra.mxu1 %v541_v8 }
  0x22   :  { %473 = vmatmul.mubr.bf16.vlgmr.msra.gmra.mrb[0].mxu0 %v542_v9  ;;  %497 = vmatmul.mubr.bf16.vlgmr.msra.gmra.mrb[0].mxu1 %v543_v10 }
  0x23   :  { %476 = vmatprep.mubr.msk.bf16.mxu0 %vm554_vm0, %v553_v0  ;;  %500 = vmatprep.mubr.msk.bf16.mxu1 %vm554_vm0, %v553_v0 }
  0x2a   :  { %477 = vmatmul.mubr.bf16.gmra.mrb[4].mxu0 %v544_v11  ;;  %501 = vmatmul.mubr.bf16.gmra.mrb[4].mxu1 %v545_v12 }
  0x2b   :  { %480 = vmatprep.mubr.msk.bf16.mxu0 %vm554_vm0, %v553_v0  ;;  %504 = vmatprep.mubr.msk.bf16.mxu1 %vm554_vm0, %v553_v0 }
  0x32   :  { %481 = vmatmul.mubr.bf16.gmra.mrb[8].mxu0 %v546_v13  ;;  %505 = vmatmul.mubr.bf16.gmra.mrb[8].mxu1 %v547_v14 }
  0x33   :  { %484 = vmatprep.mubr.msk.bf16.mxu0 %vm554_vm0, %v553_v0  ;;  %508 = vmatprep.mubr.msk.bf16.mxu1 %vm554_vm0, %v553_v0 }
  0x3a   :  { %485 = vmatmul.mubr.bf16.gmra.mrb[12].mxu0 %v548_v15  ;;  %509 = vmatmul.mubr.bf16.gmra.mrb[12].mxu1 %v549_v16 }
  0x3b   :  { %488 = vmatprep.mubr.msk.bf16.mxu0 %vm554_vm0, %v553_v0  ;;  %512 = vmatprep.mubr.msk.bf16.mxu1 %vm554_vm0, %v553_v0 }
  0x42   :  { %489 = vmatmul.mubr.bf16.gmra.mrb[16].mxu0 %v550_v17  ;;  %513 = vmatmul.mubr.bf16.gmra.mrb[16].mxu1 %v551_v18 }
  0x43   :  { %492 = vmatprep.mubr.msk.bf16.mxu0 %vm554_vm0, %v553_v0 }
  0x4a   :  { %493 = vmatmul.mubr.bf16.gmra.mrb[20].mxu0 %v552_v19 }
  0xf5   :  { %v241_v20 = vpop.f32.mrb[0].mxu0  ;;  %v289_v21 = vpop.f32.mrb[0].mxu1 }
  0xf6   :  { %393 = vst [vmem:[%s730_s2] sm:$0xff] %v241_v20  ;;  %v474_v22 = vpop.f32.mrb[1].mxu0  ;;  %405 = vst [vmem:[%s730_s2 + $0x60] sm:$0xff] %v289_v21  ;;  %v498_v23 = vpop.f32.mrb[1].mxu1 }
  0xf7   :  { %v244_v24 = vpop.f32.mrb[2].mxu0  ;;  %v292_v25 = vpop.f32.mrb[2].mxu1 }
  0xf8   :  { %394 = vst [vmem:[%s730_s2 + $0x8] sm:$0xff] %v244_v24  ;;  %v475_v26 = vpop.f32.mrb[3].mxu0  ;;  %406 = vst [vmem:[%s730_s2 + $0x68] sm:$0xff] %v292_v25  ;;  %v499_v27 = vpop.f32.mrb[3].mxu1 }
  0xfd   :  { %v249_v28 = vpop.f32.mrb[4].mxu0  ;;  %v297_v29 = vpop.f32.mrb[4].mxu1 }
  0xfe   :  { %395 = vst [vmem:[%s730_s2 + $0x10] sm:$0xff] %v249_v28  ;;  %v478_v30 = vpop.f32.mrb[5].mxu0  ;;  %407 = vst [vmem:[%s730_s2 + $0x70] sm:$0xff] %v297_v29  ;;  %v502_v31 = vpop.f32.mrb[5].mxu1 }
  0xff   :  { %v252_v32 = vpop.f32.mrb[6].mxu0  ;;  %v300_v33 = vpop.f32.mrb[6].mxu1 }
 0x100   :  { %396 = vst [vmem:[%s730_s2 + $0x18] sm:$0xff] %v252_v32  ;;  %v479_v34 = vpop.f32.mrb[7].mxu0  ;;  %408 = vst [vmem:[%s730_s2 + $0x78] sm:$0xff] %v300_v33  ;;  %v503_v35 = vpop.f32.mrb[7].mxu1 }
 0x105   :  { %v257_v36 = vpop.f32.mrb[8].mxu0  ;;  %v305_v37 = vpop.f32.mrb[8].mxu1 }
 0x106   :  { %397 = vst [vmem:[%s730_s2 + $0x20] sm:$0xff] %v257_v36  ;;  %v482_v38 = vpop.f32.mrb[9].mxu0  ;;  %409 = vst [vmem:[%s730_s2 + $0x80] sm:$0xff] %v305_v37  ;;  %v506_v39 = vpop.f32.mrb[9].mxu1 }
 0x107   :  { %v260_v40 = vpop.f32.mrb[10].mxu0  ;;  %v308_v41 = vpop.f32.mrb[10].mxu1 }
 0x108   :  { %398 = vst [vmem:[%s730_s2 + $0x28] sm:$0xff] %v260_v40  ;;  %v483_v42 = vpop.f32.mrb[11].mxu0  ;;  %410 = vst [vmem:[%s730_s2 + $0x88] sm:$0xff] %v308_v41  ;;  %v507_v43 = vpop.f32.mrb[11].mxu1 }
 0x10d   :  { %v265_v44 = vpop.f32.mrb[12].mxu0  ;;  %v313_v45 = vpop.f32.mrb[12].mxu1 }
 0x10e   :  { %399 = vst [vmem:[%s730_s2 + $0x30] sm:$0xff] %v265_v44  ;;  %v486_v46 = vpop.f32.mrb[13].mxu0  ;;  %411 = vst [vmem:[%s730_s2 + $0x90] sm:$0xff] %v313_v45  ;;  %v510_v47 = vpop.f32.mrb[13].mxu1 }
 0x10f   :  { %v268_v48 = vpop.f32.mrb[14].mxu0  ;;  %v316_v49 = vpop.f32.mrb[14].mxu1 }
 0x110   :  { %400 = vst [vmem:[%s730_s2 + $0x38] sm:$0xff] %v268_v48  ;;  %v487_v50 = vpop.f32.mrb[15].mxu0  ;;  %412 = vst [vmem:[%s730_s2 + $0x98] sm:$0xff] %v316_v49  ;;  %v511_v51 = vpop.f32.mrb[15].mxu1 }
 0x115   :  { %v273_v52 = vpop.f32.mrb[16].mxu0  ;;  %v321_v53 = vpop.f32.mrb[16].mxu1 }
 0x116   :  { %401 = vst [vmem:[%s730_s2 + $0x40] sm:$0xff] %v273_v52  ;;  %v490_v54 = vpop.f32.mrb[17].mxu0  ;;  %413 = vst [vmem:[%s730_s2 + $0xa0] sm:$0xff] %v321_v53  ;;  %v514_v55 = vpop.f32.mrb[17].mxu1 }
 0x117   :  { %v276_v56 = vpop.f32.mrb[18].mxu0  ;;  %v324_v57 = vpop.f32.mrb[18].mxu1 }
 0x118   :  { %402 = vst [vmem:[%s730_s2 + $0x48] sm:$0xff] %v276_v56  ;;  %v491_v58 = vpop.f32.mrb[19].mxu0  ;;  %v515_v59 = vpop.f32.mrb[19].mxu1 }
 0x11d   :  { %v281_v60 = vpop.f32.mrb[20].mxu0 }
 0x11e   :  { %403 = vst [vmem:[%s730_s2 + $0x50] sm:$0xff] %v281_v60  ;;  %v494_v61 = vpop.f32.mrb[21].mxu0 }
 0x11f   :  { %v284_v62 = vpop.f32.mrb[22].mxu0 }
 0x120   :  { %404 = vst [vmem:[%s730_s2 + $0x58] sm:$0xff] %v284_v62  ;;  %v495_v63 = vpop.f32.mrb[23].mxu0 }

// kernel: squeeze.6
= control target key start
LH: loop header
LB: loop body
LE: loop exit
PB: predicated region body
PF: predicated region fallthrough
CT: control target
= control target key end

     0   :  { %s130_s8 = smov 104   ;;  %s131_s9 = smov 112   ;;  %vm7_vm0 = vcmask 64512   ;;  %s221_s0 = inlined_call_operand.vmem [shape: f32[128], index: 0, kind: input, shape index: {}]   ;;  %s222_s1 = inlined_call_operand.vmem [shape: f32[16,8], index: 1, kind: output, shape index: {}]  }
   0x1   :  { %v4_v0 = vld [vmem:[%s221_s0] sm:$0x1]  ;;  %s129_s0 = smov 120   ;;  %s132_s10 = smov 96  }
   0x2   :  { %5 = vst [vmem:[#allocation0] sm:$0x1] %v4_v0  ;;  %s133_s11 = smov 88   ;;  %s134_s12 = smov 80  }
   0x3   :  { %s135_s13 = smov 72   ;;  %s136_s14 = smov 64  }
   0x4   :  { %s137_s17 = smov 56   ;;  %s138_s18 = smov 48  }
   0x5   :  { %s139_s19 = smov 40   ;;  %s140_s20 = smov 32  }
   0x6   :  { %s141_s21 = smov 24   ;;  %s142_s22 = smov 16  }
   0x7   :  { %s143_s23 = smov 8  }
   0x9   :  { %v9_v1 = vld [vmem:[#allocation0] sm:$0x1]  }
   0xa   :  { %v21_v2 = vld [vmem:[#allocation0] sm:$0x1]   ;;  %10 = vrot.lane.b32.xlu0 %v9_v1, %s129_s0 }
   0xb   :  { %22 = vrot.lane.b32.xlu1 %v21_v2, %s130_s8  ;;  %v15_v3 = vld [vmem:[#allocation0] sm:$0x1]  }
   0xc   :  { %v27_v4 = vld [vmem:[#allocation0] sm:$0x1]  }
   0xd   :  { %v33_v5 = vld [vmem:[#allocation0] sm:$0x1]  }
   0xe   :  { %16 = vrot.lane.b32.xlu0 %v15_v3, %s131_s9  ;;  %v39_v6 = vld [vmem:[#allocation0] sm:$0x1]  }
   0xf   :  { %28 = vrot.lane.b32.xlu1 %v27_v4, %s132_s10  ;;  %v45_v7 = vld [vmem:[#allocation0] sm:$0x1]  }
  0x10   :  { %v51_v8 = vld [vmem:[#allocation0] sm:$0x1]  }
  0x11   :  { %v57_v9 = vld [vmem:[#allocation0] sm:$0x1]  }
  0x12   :  { %34 = vrot.lane.b32.xlu0 %v33_v5, %s133_s11  ;;  %v63_v10 = vld [vmem:[#allocation0] sm:$0x1]  }
  0x13   :  { %40 = vrot.lane.b32.xlu1 %v39_v6, %s134_s12  ;;  %v6_v11 = vld [vmem:[#allocation0] sm:$0x1]  }
  0x14   :  { %8 = vst.msk [vmem:[%s222_s1] sm:$0x1] %vm7_vm0, %v6_v11   ;;  %v69_v12 = vld [vmem:[#allocation0] sm:$0x1]  }
  0x15   :  { %v75_v13 = vld [vmem:[#allocation0] sm:$0x1]  }
  0x16   :  { %46 = vrot.lane.b32.xlu0 %v45_v7, %s135_s13  ;;  %v81_v14 = vld [vmem:[#allocation0] sm:$0x1]  }
  0x17   :  { %52 = vrot.lane.b32.xlu1 %v51_v8, %s136_s14  ;;  %v87_v15 = vld [vmem:[#allocation0] sm:$0x1]  }
  0x18   :  { %v93_v16 = vld [vmem:[#allocation0] sm:$0x1]  }
  0x1a   :  { %58 = vrot.lane.b32.xlu0 %v57_v9, %s137_s17 }
  0x1b   :  { %64 = vrot.lane.b32.xlu1 %v63_v10, %s138_s18 }
  0x1e   :  { %70 = vrot.lane.b32.xlu0 %v69_v12, %s139_s19 }
  0x1f   :  { %76 = vrot.lane.b32.xlu1 %v75_v13, %s140_s20 }
  0x22   :  { %82 = vrot.lane.b32.xlu0 %v81_v14, %s141_s21 }
  0x23   :  { %88 = vrot.lane.b32.xlu1 %v87_v15, %s142_s22 }
  0x26   :  { %94 = vrot.lane.b32.xlu0 %v93_v16, %s143_s23 }
  0x7c   :  { %v11_v17 = vpop.permute.xlu0 %10  }
  0x7d   :  { %v23_v18 = vpop.permute.xlu1 %22   ;;  %99 = vst.msk [vmem:[%s222_s1 + $0x1] sm:$0x1] %vm7_vm0, %v11_v17  }
  0x7e   :  { %101 = vst.msk [vmem:[%s222_s1 + $0x3] sm:$0x1] %vm7_vm0, %v23_v18  }
  0x80   :  { %v17_v19 = vpop.permute.xlu0 %16  }
  0x81   :  { %v29_v20 = vpop.permute.xlu1 %28   ;;  %100 = vst.msk [vmem:[%s222_s1 + $0x2] sm:$0x1] %vm7_vm0, %v17_v19  }
  0x82   :  { %102 = vst.msk [vmem:[%s222_s1 + $0x4] sm:$0x1] %vm7_vm0, %v29_v20  }
  0x84   :  { %v35_v21 = vpop.permute.xlu0 %34  }
  0x85   :  { %v41_v22 = vpop.permute.xlu1 %40   ;;  %103 = vst.msk [vmem:[%s222_s1 + $0x5] sm:$0x1] %vm7_vm0, %v35_v21  }
  0x86   :  { %104 = vst.msk [vmem:[%s222_s1 + $0x6] sm:$0x1] %vm7_vm0, %v41_v22  }
  0x88   :  { %v47_v23 = vpop.permute.xlu0 %46  }
  0x89   :  { %v53_v24 = vpop.permute.xlu1 %52   ;;  %105 = vst.msk [vmem:[%s222_s1 + $0x7] sm:$0x1] %vm7_vm0, %v47_v23  }
  0x8a   :  { %106 = vst.msk [vmem:[%s222_s1 + $0x8] sm:$0x1] %vm7_vm0, %v53_v24  }
  0x8c   :  { %v59_v25 = vpop.permute.xlu0 %58  }
  0x8d   :  { %v65_v26 = vpop.permute.xlu1 %64   ;;  %107 = vst.msk [vmem:[%s222_s1 + $0x9] sm:$0x1] %vm7_vm0, %v59_v25  }
  0x8e   :  { %108 = vst.msk [vmem:[%s222_s1 + $0xa] sm:$0x1] %vm7_vm0, %v65_v26  }
  0x90   :  { %v71_v27 = vpop.permute.xlu0 %70  }
  0x91   :  { %v77_v28 = vpop.permute.xlu1 %76   ;;  %109 = vst.msk [vmem:[%s222_s1 + $0xb] sm:$0x1] %vm7_vm0, %v71_v27  }
  0x92   :  { %110 = vst.msk [vmem:[%s222_s1 + $0xc] sm:$0x1] %vm7_vm0, %v77_v28  }
  0x94   :  { %v83_v29 = vpop.permute.xlu0 %82  }
  0x95   :  { %v89_v30 = vpop.permute.xlu1 %88   ;;  %111 = vst.msk [vmem:[%s222_s1 + $0xd] sm:$0x1] %vm7_vm0, %v83_v29  }
  0x96   :  { %112 = vst.msk [vmem:[%s222_s1 + $0xe] sm:$0x1] %vm7_vm0, %v89_v30  }
  0x98   :  { %v95_v31 = vpop.permute.xlu0 %94  }
  0x99   :  { %113 = vst.msk [vmem:[%s222_s1 + $0xf] sm:$0x1] %vm7_vm0, %v95_v31  }

// kernel: tile.38
= control target key start
LH: loop header
LB: loop body
LE: loop exit
PB: predicated region body
PF: predicated region fallthrough
CT: control target
= control target key end

     0   :  { %s28_s0 = inlined_call_operand.vmem [shape: f32[8], index: 0, kind: input, shape index: {}]   ;;  %s29_s1 = inlined_call_operand.vmem [shape: f32[16,8], index: 1, kind: output, shape index: {}]  }
   0x1   :  { %v4_v0 = vld [vmem:[%s28_s0] ss:$0 sm:$0xff] }
   0x2   :  { %5 = vst [vmem:[%s29_s1] sm:$0xff] %v4_v0  ;;  %8 = vst [vmem:[%s29_s1 + $0x8] sm:$0xff] %v4_v0 }

// kernel: tile.39
= control target key start
LH: loop header
LB: loop body
LE: loop exit
PB: predicated region body
PF: predicated region fallthrough
CT: control target
= control target key end

     0   :  { %s131_s10 = smov 120   ;;  %s132_s11 = smov 104   ;;  %vm3_vm0 = vcmask 64512   ;;  %vm9_vm1 = vcmask 1048512   ;;  %vm15_vm2 = vcmask 982912   ;;  %vm21_vm3 = vcmask 917312   ;;  %s207_s0 = inlined_call_operand.vmem [shape: f32[16,8], index: 0, kind: input, shape index: {}]   ;;  %s208_s1 = inlined_call_operand.vmem [shape: f32[1,128], index: 1, kind: output, shape index: {}]  }
   0x1   :  { %v101_v0 = vld [vmem:[%s207_s0 + $0xf] sm:$0x1]   ;;  %v103_v1 = vld [vmem:[%s207_s0 + $0xd] sm:$0x1]   ;;  %v102_v2 = vld [vmem:[%s207_s0 + $0xe] sm:$0x1]  }
   0x2   :  { %7 = vrot.lane.b32.xlu0 %v101_v0, %s131_s10  ;;  %19 = vrot.lane.b32.xlu1 %v103_v1, %s132_s11  ;;  %v104_v3 = vld [vmem:[%s207_s0 + $0xc] sm:$0x1]   ;;  %s133_s16 = smov 112   ;;  %s134_s17 = smov 96   ;;  %v105_v4 = vld [vmem:[%s207_s0 + $0xb] sm:$0x1]  }
   0x3   :  { %v106_v5 = vld [vmem:[%s207_s0 + $0xa] sm:$0x1]   ;;  %v2_v6 = vld [vmem:[%s207_s0] sm:$0x1]   ;;  %s135_s24 = smov 88   ;;  %s136_s25 = smov 80  }
   0x4   :  { %4 = vst.msk [vmem:[#allocation0] sm:$0x1] %vm3_vm0, %v2_v6   ;;  %v107_v7 = vld [vmem:[%s207_s0 + $0x9] sm:$0x1]   ;;  %v108_v8 = vld [vmem:[%s207_s0 + $0x8] sm:$0x1]  }
   0x5   :  { %s137_s30 = smov 72   ;;  %s138_s2 = smov 64   ;;  %v109_v9 = vld [vmem:[%s207_s0 + $0x7] sm:$0x1]   ;;  %v110_v10 = vld [vmem:[%s207_s0 + $0x6] sm:$0x1]  }
   0x6   :  { %13 = vrot.lane.b32.xlu0 %v102_v2, %s133_s16  ;;  %25 = vrot.lane.b32.xlu1 %v104_v3, %s134_s17  ;;  %s139_s7 = smov 56   ;;  %s140_s8 = smov 48   ;;  %v111_v11 = vld [vmem:[%s207_s0 + $0x5] sm:$0x1]   ;;  %v112_v12 = vld [vmem:[%s207_s0 + $0x4] sm:$0x1]  }
   0x7   :  { %s141_s13 = smov 40   ;;  %s142_s14 = smov 32   ;;  %v113_v13 = vld [vmem:[%s207_s0 + $0x3] sm:$0x1]   ;;  %v114_v14 = vld [vmem:[%s207_s0 + $0x2] sm:$0x1]  }
   0x8   :  { %s143_s19 = smov 24   ;;  %s144_s20 = smov 16   ;;  %v115_v15 = vld [vmem:[%s207_s0 + $0x1] sm:$0x1]   ;;  %vm27_vm4 = vcmask 851712   ;;  %vm33_vm5 = vcmask 786112  }
   0x9   :  { %s145_s0 = smov 8   ;;  %vm39_vm6 = vcmask 720512   ;;  %vm45_vm7 = vcmask 654912   ;;  %vm51_vm8 = vcmask 589312   ;;  %vm57_vm9 = vcmask 523712  }
   0xa   :  { %31 = vrot.lane.b32.xlu0 %v105_v4, %s135_s24  ;;  %37 = vrot.lane.b32.xlu1 %v106_v5, %s136_s25  ;;  %vm63_vm10 = vcmask 458112   ;;  %vm69_vm11 = vcmask 392512   ;;  %vm75_vm12 = vcmask 326912   ;;  %vm81_vm13 = vcmask 261312  }
   0xb   :  { %vm87_vm14 = vcmask 195712   ;;  %vm93_vm15 = vcmask 130112  }
   0xe   :  { %43 = vrot.lane.b32.xlu0 %v107_v7, %s137_s30  ;;  %49 = vrot.lane.b32.xlu1 %v108_v8, %s138_s2 }
  0x12   :  { %55 = vrot.lane.b32.xlu0 %v109_v9, %s139_s7  ;;  %61 = vrot.lane.b32.xlu1 %v110_v10, %s140_s8 }
  0x16   :  { %67 = vrot.lane.b32.xlu0 %v111_v11, %s141_s13  ;;  %73 = vrot.lane.b32.xlu1 %v112_v12, %s142_s14 }
  0x1a   :  { %79 = vrot.lane.b32.xlu0 %v113_v13, %s143_s19  ;;  %85 = vrot.lane.b32.xlu1 %v114_v14, %s144_s20 }
  0x1e   :  { %91 = vrot.lane.b32.xlu0 %v115_v15, %s145_s0 }
  0x74   :  { %v8_v16 = vpop.permute.xlu0 %7   ;;  %v20_v17 = vpop.permute.xlu1 %19  }
  0x75   :  { %10 = vst.msk [vmem:[#allocation0] sm:$0x1] %vm9_vm1, %v8_v16  }
  0x78   :  { %v14_v18 = vpop.permute.xlu0 %13   ;;  %v26_v19 = vpop.permute.xlu1 %25  }
  0x79   :  { %16 = vst.msk [vmem:[#allocation0] sm:$0x1] %vm15_vm2, %v14_v18  }
  0x7a   :  { %22 = vst.msk [vmem:[#allocation0] sm:$0x1] %vm21_vm3, %v20_v17  }
  0x7b   :  { %28 = vst.msk [vmem:[#allocation0] sm:$0x1] %vm27_vm4, %v26_v19  }
  0x7c   :  { %v32_v20 = vpop.permute.xlu0 %31   ;;  %v38_v21 = vpop.permute.xlu1 %37  }
  0x7d   :  { %34 = vst.msk [vmem:[#allocation0] sm:$0x1] %vm33_vm5, %v32_v20  }
  0x7e   :  { %40 = vst.msk [vmem:[#allocation0] sm:$0x1] %vm39_vm6, %v38_v21  }
  0x80   :  { %v44_v22 = vpop.permute.xlu0 %43   ;;  %v50_v23 = vpop.permute.xlu1 %49  }
  0x81   :  { %46 = vst.msk [vmem:[#allocation0] sm:$0x1] %vm45_vm7, %v44_v22  }
  0x82   :  { %52 = vst.msk [vmem:[#allocation0] sm:$0x1] %vm51_vm8, %v50_v23  }
  0x84   :  { %v56_v24 = vpop.permute.xlu0 %55   ;;  %v62_v25 = vpop.permute.xlu1 %61  }
  0x85   :  { %58 = vst.msk [vmem:[#allocation0] sm:$0x1] %vm57_vm9, %v56_v24  }
  0x86   :  { %64 = vst.msk [vmem:[#allocation0] sm:$0x1] %vm63_vm10, %v62_v25  }
  0x88   :  { %v68_v26 = vpop.permute.xlu0 %67   ;;  %v74_v27 = vpop.permute.xlu1 %73  }
  0x89   :  { %70 = vst.msk [vmem:[#allocation0] sm:$0x1] %vm69_vm11, %v68_v26  }
  0x8a   :  { %76 = vst.msk [vmem:[#allocation0] sm:$0x1] %vm75_vm12, %v74_v27  }
  0x8c   :  { %v80_v28 = vpop.permute.xlu0 %79   ;;  %v86_v29 = vpop.permute.xlu1 %85  }
  0x8d   :  { %82 = vst.msk [vmem:[#allocation0] sm:$0x1] %vm81_vm13, %v80_v28  }
  0x8e   :  { %88 = vst.msk [vmem:[#allocation0] sm:$0x1] %vm87_vm14, %v86_v29  }
  0x90   :  { %v92_v30 = vpop.permute.xlu0 %91  }
  0x91   :  { %94 = vst.msk [vmem:[#allocation0] sm:$0x1] %vm93_vm15, %v92_v30  }
  0x98   :  { %v98_v31 = vld [vmem:[#allocation0] sm:$0x1] }
  0x99   :  { %100 = vst [vmem:[%s208_s1] sm:$0x1] %v98_v31 }

// kernel: generator_forward.13
= control target key start
LH: loop header
LB: loop body
LE: loop exit
PB: predicated region body
PF: predicated region fallthrough
CT: control target
= control target key end

     0   :  { %v57_v0 = vmov 0.0   ;;  %s103_s1 = inlined_call_operand.vmem [shape: f32[1,128], index: 1, kind: output, shape index: {0}]   ;;  %s104_s2 = inlined_call_operand.vmem [shape: f32[1,128], index: 2, kind: output, shape index: {1}]   ;;  %s105_s0 = inlined_call_operand.vmem [shape: f32[32,128], index: 0, kind: input, shape index: {}]  }
   0x1   :  { %14 = vst [vmem:[%s103_s1] sm:$0x1] %v57_v0  ;;  %15 = vst [vmem:[%s104_s2] sm:$0x1] %v57_v0  ;;  %v16_v1 = vld [vmem:[%s105_s0] sm:$0xff]  ;;  %v17_v2 = vld [vmem:[%s105_s0 + $0x8] sm:$0xff] }
   0x2   :  { %v18_v3 = vld [vmem:[%s105_s0 + $0x10] sm:$0xff]  ;;  %v19_v4 = vld [vmem:[%s105_s0 + $0x18] sm:$0xff]  ;;  %v21_v5 = vadd.f32 %v17_v2, %v16_v1  ;;  %v33_v6 = vmul.f32 %v16_v1, %v16_v1  ;;  %v34_v7 = vmul.f32 %v17_v2, %v17_v2 }
   0x3   :  { %v35_v8 = vmul.f32 %v18_v3, %v18_v3  ;;  %v36_v10 = vmul.f32 %v19_v4, %v19_v4 }
   0x4   :  { %v22_v9 = vadd.f32 %v21_v5, %v18_v3  ;;  %v37_v11 = vadd.f32 %v34_v7, %v33_v6 }
   0x6   :  { %v23_v12 = vadd.f32 %v22_v9, %v19_v4  ;;  %v38_v13 = vadd.f32 %v37_v11, %v35_v8 }
   0x8   :  { %v24_v14 = vrot.slane %v23_v12, 4  ;;  %v39_v15 = vadd.f32 %v38_v13, %v36_v10  ;;  %v20_v24 = vld [vmem:[%s103_s1] sm:$0x1] }
   0x9   :  { %v32_v27 = vld [vmem:[%s104_s2] sm:$0x1] }
   0xa   :  { %v25_v16 = vadd.f32 %v24_v14, %v23_v12  ;;  %v40_v17 = vrot.slane %v39_v15, 4 }
   0xc   :  { %v26_v18 = vrot.slane %v25_v16, 2  ;;  %v41_v19 = vadd.f32 %v40_v17, %v39_v15 }
   0xe   :  { %v27_v20 = vadd.f32 %v26_v18, %v25_v16  ;;  %v42_v21 = vrot.slane %v41_v19, 2 }
  0x10   :  { %v28_v22 = vrot.slane %v27_v20, 1  ;;  %v43_v23 = vadd.f32 %v42_v21, %v41_v19 }
  0x12   :  { %v29_v25 = vadd.f32 %v28_v22, %v27_v20  ;;  %v44_v26 = vrot.slane %v43_v23, 1 }
  0x14   :  { %v30_v28 = vadd.f32 %v29_v25, %v20_v24  ;;  %v45_v29 = vadd.f32 %v44_v26, %v43_v23 }
  0x16   :  { %31 = vst [vmem:[%s103_s1] sm:$0x1] %v30_v28  ;;  %v46_v30 = vadd.f32 %v45_v29, %v32_v27 }
  0x18   :  { %47 = vst [vmem:[%s104_s2] sm:$0x1] %v46_v30 }

// kernel: generator_forward.14
= control target key start
LH: loop header
LB: loop body
LE: loop exit
PB: predicated region body
PF: predicated region fallthrough
CT: control target
= control target key end

     0   :  { %s104_s0 = inlined_call_operand.vmem [shape: f32[32,128], index: 0, kind: input, shape index: {}]   ;;  %s105_s1 = inlined_call_operand.vmem [shape: f32[1,128], index: 1, kind: input, shape index: {}]   ;;  %s106_s2 = inlined_call_operand.vmem [shape: f32[1,128], index: 2, kind: input, shape index: {}]   ;;  %s107_s3 = inlined_call_operand.vmem [shape: f32[32,128], index: 3, kind: output, shape index: {}]  }
   0x1   :  { %v14_v0 = vld [vmem:[%s104_s0] sm:$0xff]  ;;  %v15_v4 = vld [vmem:[%s104_s0 + $0x8] sm:$0xff]  ;;  %v16_v5 = vld [vmem:[%s104_s0 + $0x10] sm:$0xff] }
   0x2   :  { %v52_v1 = vld [vmem:[%s105_s1] ss:$0 sm:$0xff]  ;;  %v17_v6 = vld [vmem:[%s104_s0 + $0x18] sm:$0xff] }
   0x3   :  { %v53_v2 = vld [vmem:[%s106_s2] ss:$0 sm:$0xff]  ;;  %v25_v3 = vmul.f32 %v52_v1, %v14_v0  ;;  %v26_v7 = vmul.f32 %v52_v1, %v15_v4  ;;  %v27_v8 = vmul.f32 %v52_v1, %v16_v5  ;;  %v28_v9 = vmul.f32 %v52_v1, %v17_v6 }
   0x5   :  { %v36_v10 = vadd.f32 %v53_v2, %v25_v3  ;;  %v37_v11 = vadd.f32 %v53_v2, %v26_v7  ;;  %v38_v12 = vadd.f32 %v53_v2, %v27_v8  ;;  %v39_v13 = vadd.f32 %v53_v2, %v28_v9 }
   0x7   :  { %v40_v14 = vmax.f32 %v36_v10, 0.0  ;;  %v41_v15 = vmax.f32 %v37_v11, 0.0  ;;  %v42_v16 = vmax.f32 %v38_v12, 0.0  ;;  %v43_v17 = vmax.f32 %v39_v13, 0.0 }
   0x9   :  { %44 = vst [vmem:[%s107_s3] sm:$0xff] %v40_v14  ;;  %45 = vst [vmem:[%s107_s3 + $0x8] sm:$0xff] %v41_v15 }
   0xa   :  { %46 = vst [vmem:[%s107_s3 + $0x10] sm:$0xff] %v42_v16  ;;  %47 = vst [vmem:[%s107_s3 + $0x18] sm:$0xff] %v43_v17 }

// kernel: generator_forward.15
= control target key start
LH: loop header
LB: loop body
LE: loop exit
PB: predicated region body
PF: predicated region fallthrough
CT: control target
= control target key end

     0   :  { %v1682_v0 = vmov 0.0   ;;  %vm1683_vm0 = vmmov 0   ;;  %s2143_s1 = inlined_call_operand.vmem [shape: bf16[128,128], index: 1, kind: input, shape index: {}]   ;;  %s2144_s0 = inlined_call_operand.vmem [shape: bf16[584,128], index: 0, kind: input, shape index: {}]   ;;  %s2145_s2 = inlined_call_operand.vmem [shape: f32[584,128], index: 2, kind: output, shape index: {}]  }
   0x1   :  { %1309 = vmatprep.subr.bf16.mxu0 %v1682_v0  ;;  %v1491_v1 = vld [vmem:[%s2143_s1] sm:$0xff]   ;;  %1473 = vmatprep.subr.bf16.mxu1 %v1682_v0  ;;  %v1492_v2 = vld [vmem:[%s2143_s1 + $0x8] sm:$0xff]   ;;  %v1493_v3 = vld [vmem:[%s2143_s1 + $0x10] sm:$0xff]  }
   0x2   :  { %1325 = vmatprep.mubr.msk.bf16.mxu0 %vm1683_vm0, %v1682_v0  ;;  %1401 = vmatprep.mubr.msk.bf16.mxu1 %vm1683_vm0, %v1682_v0  ;;  %v1494_v4 = vld [vmem:[%s2143_s1 + $0x18] sm:$0xff]   ;;  %v1495_v5 = vld [vmem:[%s2143_s1 + $0x20] sm:$0xff]   ;;  %v1496_v6 = vld [vmem:[%s2143_s1 + $0x28] sm:$0xff]  }
   0x3   :  { %1310 = vmatpush3.bf16.msra.mxu0 %v1491_v1  ;;  %1481 = vmatpush3.bf16.msra.mxu1 %v1491_v1  ;;  %v1497_v7 = vld [vmem:[%s2143_s1 + $0x30] sm:$0xff]   ;;  %v1498_v8 = vld [vmem:[%s2143_s1 + $0x38] sm:$0xff]   ;;  %v1499_v9 = vld [vmem:[%s2144_s0] sm:$0xff]  }
   0x4   :  { %1311 = vmatprep.subr.bf16.mxu0 %v1682_v0  ;;  %1474 = vmatprep.subr.bf16.mxu1 %v1682_v0  ;;  %v1500_v10 = vld [vmem:[%s2144_s0 + $0x98] sm:$0xff]   ;;  %v1501_v11 = vld [vmem:[%s2144_s0 + $0x8] sm:$0xff]   ;;  %v1502_v12 = vld [vmem:[%s2144_s0 + $0xa0] sm:$0xff]  }
   0x5   :  { %v1503_v13 = vld [vmem:[%s2144_s0 + $0x10] sm:$0xff]   ;;  %v1504_v14 = vld [vmem:[%s2144_s0 + $0xa8] sm:$0xff]   ;;  %v1505_v15 = vld [vmem:[%s2144_s0 + $0x18] sm:$0xff]  }
   0x6   :  { %v1506_v16 = vld [vmem:[%s2144_s0 + $0xb0] sm:$0xff]   ;;  %v1507_v17 = vld [vmem:[%s2144_s0 + $0x20] sm:$0xff]   ;;  %v1508_v18 = vld [vmem:[%s2144_s0 + $0xb8] sm:$0xff]  }
   0x7   :  { %1312 = vmatpush3.bf16.msra.mxu0 %v1492_v2  ;;  %1482 = vmatpush3.bf16.msra.mxu1 %v1492_v2  ;;  %v1509_v19 = vld [vmem:[%s2144_s0 + $0x28] sm:$0xff]   ;;  %v1510_v20 = vld [vmem:[%s2144_s0 + $0xc0] sm:$0xff]   ;;  %v1511_v21 = vld [vmem:[%s2144_s0 + $0x30] sm:$0xff]  }
   0x8   :  { %1313 = vmatprep.subr.bf16.mxu0 %v1682_v0  ;;  %1475 = vmatprep.subr.bf16.mxu1 %v1682_v0  ;;  %v1512_v22 = vld [vmem:[%s2144_s0 + $0xc8] sm:$0xff]   ;;  %v1513_v23 = vld [vmem:[%s2144_s0 + $0x38] sm:$0xff]   ;;  %v1514_v24 = vld [vmem:[%s2144_s0 + $0xd0] sm:$0xff]  }
   0x9   :  { %v1515_v25 = vld [vmem:[%s2144_s0 + $0x40] sm:$0xff]   ;;  %v1516_v26 = vld [vmem:[%s2144_s0 + $0xd8] sm:$0xff]   ;;  %v1517_v27 = vld [vmem:[%s2144_s0 + $0x48] sm:$0xff]  }
   0xa   :  { %v1518_v28 = vld [vmem:[%s2144_s0 + $0xe0] sm:$0xff]   ;;  %v1519_v29 = vld [vmem:[%s2144_s0 + $0x50] sm:$0xff]   ;;  %v1520_v30 = vld [vmem:[%s2144_s0 + $0xe8] sm:$0xff]  }
   0xb   :  { %1314 = vmatpush3.bf16.msra.mxu0 %v1493_v3  ;;  %1483 = vmatpush3.bf16.msra.mxu1 %v1493_v3  ;;  %v1521_v31 = vld [vmem:[%s2144_s0 + $0x58] sm:$0xff]   ;;  %v1522_v32 = vld [vmem:[%s2144_s0 + $0xf0] sm:$0xff]   ;;  %v1523_v33 = vld [vmem:[%s2144_s0 + $0x60] sm:$0xff]  }
   0xc   :  { %1315 = vmatprep.subr.bf16.mxu0 %v1682_v0  ;;  %1476 = vmatprep.subr.bf16.mxu1 %v1682_v0  ;;  %v1524_v34 = vld [vmem:[%s2144_s0 + $0xf8] sm:$0xff]   ;;  %v1525_v35 = vld [vmem:[%s2144_s0 + $0x68] sm:$0xff]   ;;  %v1526_v36 = vld [vmem:[%s2144_s0 + $0x100] sm:$0xff]  }
   0xd   :  { %v1527_v37 = vld [vmem:[%s2144_s0 + $0x70] sm:$0xff]   ;;  %v1528_v38 = vld [vmem:[%s2144_s0 + $0x108] sm:$0xff]   ;;  %v1529_v39 = vld [vmem:[%s2144_s0 + $0x78] sm:$0xff]  }
   0xe   :  { %v1530_v40 = vld [vmem:[%s2144_s0 + $0x110] sm:$0xff]   ;;  %v1531_v41 = vld [vmem:[%s2144_s0 + $0x80] sm:$0xff]   ;;  %v1532_v42 = vld [vmem:[%s2144_s0 + $0x118] sm:$0xff]  }
   0xf   :  { %1316 = vmatpush3.bf16.msra.mxu0 %v1494_v4  ;;  %1484 = vmatpush3.bf16.msra.mxu1 %v1494_v4  ;;  %v1533_v43 = vld [vmem:[%s2144_s0 + $0x88] sm:$0xff]   ;;  %v1534_v44 = vld [vmem:[%s2144_s0 + $0x120] ss:$0 sps:$4 sm:$0xff]   ;;  %v1535_v45 = vld [vmem:[%s2144_s0 + $0x90] sm:$0xff]  }
  0x10   :  { %1317 = vmatprep.subr.bf16.mxu0 %v1682_v0  ;;  %1477 = vmatprep.subr.bf16.mxu1 %v1682_v0 }
  0x13   :  { %1318 = vmatpush3.bf16.msra.mxu0 %v1495_v5  ;;  %1485 = vmatpush3.bf16.msra.mxu1 %v1495_v5 }
  0x14   :  { %1319 = vmatprep.subr.bf16.mxu0 %v1682_v0  ;;  %1478 = vmatprep.subr.bf16.mxu1 %v1682_v0 }
  0x17   :  { %1320 = vmatpush3.bf16.msra.mxu0 %v1496_v6  ;;  %1486 = vmatpush3.bf16.msra.mxu1 %v1496_v6 }
  0x18   :  { %1321 = vmatprep.subr.bf16.mxu0 %v1682_v0  ;;  %1479 = vmatprep.subr.bf16.mxu1 %v1682_v0 }
  0x1b   :  { %1322 = vmatpush3.bf16.msra.mxu0 %v1497_v7  ;;  %1487 = vmatpush3.bf16.msra.mxu1 %v1497_v7 }
  0x1c   :  { %1323 = vmatprep.subr.bf16.mxu0 %v1682_v0  ;;  %1480 = vmatprep.subr.bf16.mxu1 %v1682_v0 }
  0x1f   :  { %1324 = vmatpush3.bf16.msra.mxu0 %v1498_v8  ;;  %1488 = vmatpush3.bf16.msra.mxu1 %v1498_v8 }
  0x22   :  { %1326 = vmatmul.mubr.bf16.vlgmr.msra.gmra.mrb[0].mxu0 %v1499_v9  ;;  %1402 = vmatmul.mubr.bf16.vlgmr.msra.gmra.mrb[0].mxu1 %v1500_v10 }
  0x23   :  { %1329 = vmatprep.mubr.msk.bf16.mxu0 %vm1683_vm0, %v1682_v0  ;;  %1405 = vmatprep.mubr.msk.bf16.mxu1 %vm1683_vm0, %v1682_v0 }
  0x2a   :  { %1330 = vmatmul.mubr.bf16.gmra.mrb[4].mxu0 %v1501_v11  ;;  %1406 = vmatmul.mubr.bf16.gmra.mrb[4].mxu1 %v1502_v12 }
  0x2b   :  { %1333 = vmatprep.mubr.msk.bf16.mxu0 %vm1683_vm0, %v1682_v0  ;;  %1409 = vmatprep.mubr.msk.bf16.mxu1 %vm1683_vm0, %v1682_v0 }
  0x32   :  { %1334 = vmatmul.mubr.bf16.gmra.mrb[8].mxu0 %v1503_v13  ;;  %1410 = vmatmul.mubr.bf16.gmra.mrb[8].mxu1 %v1504_v14 }
  0x33   :  { %1337 = vmatprep.mubr.msk.bf16.mxu0 %vm1683_vm0, %v1682_v0  ;;  %1413 = vmatprep.mubr.msk.bf16.mxu1 %vm1683_vm0, %v1682_v0 }
  0x3a   :  { %1338 = vmatmul.mubr.bf16.gmra.mrb[12].mxu0 %v1505_v15  ;;  %1414 = vmatmul.mubr.bf16.gmra.mrb[12].mxu1 %v1506_v16 }
  0x3b   :  { %1341 = vmatprep.mubr.msk.bf16.mxu0 %vm1683_vm0, %v1682_v0  ;;  %1417 = vmatprep.mubr.msk.bf16.mxu1 %vm1683_vm0, %v1682_v0 }
  0x42   :  { %1342 = vmatmul.mubr.bf16.gmra.mrb[16].mxu0 %v1507_v17  ;;  %1418 = vmatmul.mubr.bf16.gmra.mrb[16].mxu1 %v1508_v18 }
  0x43   :  { %1345 = vmatprep.mubr.msk.bf16.mxu0 %vm1683_vm0, %v1682_v0  ;;  %1421 = vmatprep.mubr.msk.bf16.mxu1 %vm1683_vm0, %v1682_v0 }
  0x4a   :  { %1346 = vmatmul.mubr.bf16.gmra.mrb[20].mxu0 %v1509_v19  ;;  %1422 = vmatmul.mubr.bf16.gmra.mrb[20].mxu1 %v1510_v20 }
  0x4b   :  { %1349 = vmatprep.mubr.msk.bf16.mxu0 %vm1683_vm0, %v1682_v0  ;;  %1425 = vmatprep.mubr.msk.bf16.mxu1 %vm1683_vm0, %v1682_v0 }
  0x52   :  { %1350 = vmatmul.mubr.bf16.gmra.mrb[24].mxu0 %v1511_v21  ;;  %1426 = vmatmul.mubr.bf16.gmra.mrb[24].mxu1 %v1512_v22 }
  0x53   :  { %1353 = vmatprep.mubr.msk.bf16.mxu0 %vm1683_vm0, %v1682_v0  ;;  %1429 = vmatprep.mubr.msk.bf16.mxu1 %vm1683_vm0, %v1682_v0 }
  0x5a   :  { %1354 = vmatmul.mubr.bf16.gmra.mrb[28].mxu0 %v1513_v23  ;;  %1430 = vmatmul.mubr.bf16.gmra.mrb[28].mxu1 %v1514_v24 }
  0x5b   :  { %1357 = vmatprep.mubr.msk.bf16.mxu0 %vm1683_vm0, %v1682_v0  ;;  %1433 = vmatprep.mubr.msk.bf16.mxu1 %vm1683_vm0, %v1682_v0 }
  0x62   :  { %1358 = vmatmul.mubr.bf16.gmra.mrb[32].mxu0 %v1515_v25  ;;  %1434 = vmatmul.mubr.bf16.gmra.mrb[32].mxu1 %v1516_v26 }
  0x63   :  { %1361 = vmatprep.mubr.msk.bf16.mxu0 %vm1683_vm0, %v1682_v0  ;;  %1437 = vmatprep.mubr.msk.bf16.mxu1 %vm1683_vm0, %v1682_v0 }
  0x6a   :  { %1362 = vmatmul.mubr.bf16.gmra.mrb[36].mxu0 %v1517_v27  ;;  %1438 = vmatmul.mubr.bf16.gmra.mrb[36].mxu1 %v1518_v28 }
  0x6b   :  { %1365 = vmatprep.mubr.msk.bf16.mxu0 %vm1683_vm0, %v1682_v0  ;;  %1441 = vmatprep.mubr.msk.bf16.mxu1 %vm1683_vm0, %v1682_v0 }
  0x72   :  { %1366 = vmatmul.mubr.bf16.gmra.mrb[40].mxu0 %v1519_v29  ;;  %1442 = vmatmul.mubr.bf16.gmra.mrb[40].mxu1 %v1520_v30 }
  0x73   :  { %1369 = vmatprep.mubr.msk.bf16.mxu0 %vm1683_vm0, %v1682_v0  ;;  %1445 = vmatprep.mubr.msk.bf16.mxu1 %vm1683_vm0, %v1682_v0 }
  0x7a   :  { %1370 = vmatmul.mubr.bf16.gmra.mrb[44].mxu0 %v1521_v31  ;;  %1446 = vmatmul.mubr.bf16.gmra.mrb[44].mxu1 %v1522_v32 }
  0x7b   :  { %1373 = vmatprep.mubr.msk.bf16.mxu0 %vm1683_vm0, %v1682_v0  ;;  %1449 = vmatprep.mubr.msk.bf16.mxu1 %vm1683_vm0, %v1682_v0 }
  0x82   :  { %1374 = vmatmul.mubr.bf16.gmra.mrb[48].mxu0 %v1523_v33  ;;  %1450 = vmatmul.mubr.bf16.gmra.mrb[48].mxu1 %v1524_v34 }
  0x83   :  { %1377 = vmatprep.mubr.msk.bf16.mxu0 %vm1683_vm0, %v1682_v0  ;;  %1453 = vmatprep.mubr.msk.bf16.mxu1 %vm1683_vm0, %v1682_v0 }
  0x8a   :  { %1378 = vmatmul.mubr.bf16.gmra.mrb[52].mxu0 %v1525_v35  ;;  %1454 = vmatmul.mubr.bf16.gmra.mrb[52].mxu1 %v1526_v36 }
  0x8b   :  { %1381 = vmatprep.mubr.msk.bf16.mxu0 %vm1683_vm0, %v1682_v0  ;;  %1457 = vmatprep.mubr.msk.bf16.mxu1 %vm1683_vm0, %v1682_v0 }
  0x92   :  { %1382 = vmatmul.mubr.bf16.gmra.mrb[56].mxu0 %v1527_v37  ;;  %1458 = vmatmul.mubr.bf16.gmra.mrb[56].mxu1 %v1528_v38 }
  0x93   :  { %1385 = vmatprep.mubr.msk.bf16.mxu0 %vm1683_vm0, %v1682_v0  ;;  %1461 = vmatprep.mubr.msk.bf16.mxu1 %vm1683_vm0, %v1682_v0 }
  0x9a   :  { %1386 = vmatmul.mubr.bf16.gmra.mrb[60].mxu0 %v1529_v39  ;;  %1462 = vmatmul.mubr.bf16.gmra.mrb[60].mxu1 %v1530_v40 }
  0x9b   :  { %1389 = vmatprep.mubr.msk.bf16.mxu0 %vm1683_vm0, %v1682_v0  ;;  %1465 = vmatprep.mubr.msk.bf16.mxu1 %vm1683_vm0, %v1682_v0 }
  0xa2   :  { %1390 = vmatmul.mubr.bf16.gmra.mrb[64].mxu0 %v1531_v41  ;;  %1466 = vmatmul.mubr.bf16.gmra.mrb[64].mxu1 %v1532_v42 }
  0xa3   :  { %1393 = vmatprep.mubr.msk.bf16.mxu0 %vm1683_vm0, %v1682_v0  ;;  %1469 = vmatprep.mubr.msk.bf16.mxu1 %vm1683_vm0, %v1682_v0 }
  0xaa   :  { %1394 = vmatmul.mubr.bf16.gmra.mrb[68].mxu0 %v1533_v43  ;;  %1470 = vmatmul.mubr.bf16.gmra.mrb[68].mxu1 %v1534_v44 }
  0xab   :  { %1397 = vmatprep.mubr.msk.bf16.mxu0 %vm1683_vm0, %v1682_v0 }
  0xb2   :  { %1398 = vmatmul.mubr.bf16.gmra.mrb[72].mxu0 %v1535_v45 }
  0xf5   :  { %v553_v46 = vpop.f32.mrb[0].mxu0  ;;  %v705_v47 = vpop.f32.mrb[0].mxu1 }
  0xf6   :  { %1536 = vtanh.f32 %v553_v46  ;;  %v1327_v48 = vpop.f32.mrb[1].mxu0  ;;  %v1403_v49 = vpop.f32.mrb[1].mxu1 }
  0xf7   :  { %v556_v50 = vpop.f32.mrb[2].mxu0  ;;  %1538 = vtanh.f32 %v705_v47  ;;  %v708_v51 = vpop.f32.mrb[2].mxu1 }
  0xf8   :  { %1540 = vtanh.f32 %v556_v50  ;;  %v1328_v52 = vpop.f32.mrb[3].mxu0  ;;  %v1404_v53 = vpop.f32.mrb[3].mxu1 }
  0xf9   :  { %1542 = vtanh.f32 %v708_v51 }
  0xfd   :  { %v561_v54 = vpop.f32.mrb[4].mxu0  ;;  %v713_v55 = vpop.f32.mrb[4].mxu1 }
  0xfe   :  { %1544 = vtanh.f32 %v561_v54  ;;  %v1331_v56 = vpop.f32.mrb[5].mxu0  ;;  %v1407_v57 = vpop.f32.mrb[5].mxu1 }
  0xff   :  { %v564_v58 = vpop.f32.mrb[6].mxu0  ;;  %1546 = vtanh.f32 %v713_v55  ;;  %v716_v59 = vpop.f32.mrb[6].mxu1 }
 0x100   :  { %v1537_v60 = vpop.eup %1536  ;;  %1548 = vtanh.f32 %v564_v58  ;;  %v1332_v61 = vpop.f32.mrb[7].mxu0 }
 0x101   :  { %v1408_v62 = vpop.f32.mrb[7].mxu1  ;;  %v1539_v63 = vpop.eup %1538  ;;  %1142 = vst [vmem:[%s2145_s2] sm:$0xff] %v1537_v60  ;;  %1550 = vtanh.f32 %v716_v59 }
 0x102   :  { %v1541_v0 = vpop.eup %1540  ;;  %1180 = vst [vmem:[%s2145_s2 + $0x130] sm:$0xff] %v1539_v63 }
 0x103   :  { %v1543_v1 = vpop.eup %1542  ;;  %1143 = vst [vmem:[%s2145_s2 + $0x8] sm:$0xff] %v1541_v0 }
 0x104   :  { %1181 = vst [vmem:[%s2145_s2 + $0x138] sm:$0xff] %v1543_v1 }
 0x105   :  { %v569_v2 = vpop.f32.mrb[8].mxu0  ;;  %v721_v3 = vpop.f32.mrb[8].mxu1 }
 0x106   :  { %1552 = vtanh.f32 %v569_v2  ;;  %v1335_v4 = vpop.f32.mrb[9].mxu0  ;;  %v1411_v5 = vpop.f32.mrb[9].mxu1 }
 0x107   :  { %v572_v6 = vpop.f32.mrb[10].mxu0  ;;  %1554 = vtanh.f32 %v721_v3  ;;  %v724_v7 = vpop.f32.mrb[10].mxu1 }
 0x108   :  { %v1545_v8 = vpop.eup %1544  ;;  %1556 = vtanh.f32 %v572_v6  ;;  %v1336_v9 = vpop.f32.mrb[11].mxu0 }
 0x109   :  { %v1412_v10 = vpop.f32.mrb[11].mxu1  ;;  %v1547_v11 = vpop.eup %1546  ;;  %1144 = vst [vmem:[%s2145_s2 + $0x10] sm:$0xff] %v1545_v8  ;;  %1558 = vtanh.f32 %v724_v7 }
 0x10a   :  { %v1549_v12 = vpop.eup %1548  ;;  %1182 = vst [vmem:[%s2145_s2 + $0x140] sm:$0xff] %v1547_v11 }
 0x10b   :  { %v1551_v13 = vpop.eup %1550  ;;  %1145 = vst [vmem:[%s2145_s2 + $0x18] sm:$0xff] %v1549_v12 }
 0x10c   :  { %1183 = vst [vmem:[%s2145_s2 + $0x148] sm:$0xff] %v1551_v13 }
 0x10d   :  { %v577_v14 = vpop.f32.mrb[12].mxu0  ;;  %v729_v15 = vpop.f32.mrb[12].mxu1 }
 0x10e   :  { %1560 = vtanh.f32 %v577_v14  ;;  %v1339_v16 = vpop.f32.mrb[13].mxu0  ;;  %v1415_v17 = vpop.f32.mrb[13].mxu1 }
 0x10f   :  { %v580_v18 = vpop.f32.mrb[14].mxu0  ;;  %1562 = vtanh.f32 %v729_v15  ;;  %v732_v19 = vpop.f32.mrb[14].mxu1 }
 0x110   :  { %v1553_v20 = vpop.eup %1552  ;;  %1564 = vtanh.f32 %v580_v18  ;;  %v1340_v21 = vpop.f32.mrb[15].mxu0 }
 0x111   :  { %v1416_v22 = vpop.f32.mrb[15].mxu1  ;;  %v1555_v23 = vpop.eup %1554  ;;  %1146 = vst [vmem:[%s2145_s2 + $0x20] sm:$0xff] %v1553_v20  ;;  %1566 = vtanh.f32 %v732_v19 }
 0x112   :  { %v1557_v24 = vpop.eup %1556  ;;  %1184 = vst [vmem:[%s2145_s2 + $0x150] sm:$0xff] %v1555_v23 }
 0x113   :  { %v1559_v25 = vpop.eup %1558  ;;  %1147 = vst [vmem:[%s2145_s2 + $0x28] sm:$0xff] %v1557_v24 }
 0x114   :  { %1185 = vst [vmem:[%s2145_s2 + $0x158] sm:$0xff] %v1559_v25 }
 0x115   :  { %v585_v26 = vpop.f32.mrb[16].mxu0  ;;  %v737_v27 = vpop.f32.mrb[16].mxu1 }
 0x116   :  { %1568 = vtanh.f32 %v585_v26  ;;  %v1343_v28 = vpop.f32.mrb[17].mxu0  ;;  %v1419_v29 = vpop.f32.mrb[17].mxu1 }
 0x117   :  { %v588_v30 = vpop.f32.mrb[18].mxu0  ;;  %1570 = vtanh.f32 %v737_v27  ;;  %v740_v31 = vpop.f32.mrb[18].mxu1 }
 0x118   :  { %v1561_v32 = vpop.eup %1560  ;;  %1572 = vtanh.f32 %v588_v30  ;;  %v1344_v33 = vpop.f32.mrb[19].mxu0 }
 0x119   :  { %v1420_v34 = vpop.f32.mrb[19].mxu1  ;;  %v1563_v35 = vpop.eup %1562  ;;  %1148 = vst [vmem:[%s2145_s2 + $0x30] sm:$0xff] %v1561_v32  ;;  %1574 = vtanh.f32 %v740_v31 }
 0x11a   :  { %v1565_v36 = vpop.eup %1564  ;;  %1186 = vst [vmem:[%s2145_s2 + $0x160] sm:$0xff] %v1563_v35 }
 0x11b   :  { %v1567_v37 = vpop.eup %1566  ;;  %1149 = vst [vmem:[%s2145_s2 + $0x38] sm:$0xff] %v1565_v36 }
 0x11c   :  { %1187 = vst [vmem:[%s2145_s2 + $0x168] sm:$0xff] %v1567_v37 }
 0x11d   :  { %v593_v38 = vpop.f32.mrb[20].mxu0  ;;  %v745_v39 = vpop.f32.mrb[20].mxu1 }
 0x11e   :  { %1576 = vtanh.f32 %v593_v38  ;;  %v1347_v40 = vpop.f32.mrb[21].mxu0  ;;  %v1423_v41 = vpop.f32.mrb[21].mxu1 }
 0x11f   :  { %v596_v42 = vpop.f32.mrb[22].mxu0  ;;  %1578 = vtanh.f32 %v745_v39  ;;  %v748_v43 = vpop.f32.mrb[22].mxu1 }
 0x120   :  { %v1569_v44 = vpop.eup %1568  ;;  %1580 = vtanh.f32 %v596_v42  ;;  %v1348_v45 = vpop.f32.mrb[23].mxu0 }
 0x121   :  { %v1424_v46 = vpop.f32.mrb[23].mxu1  ;;  %v1571_v47 = vpop.eup %1570  ;;  %1150 = vst [vmem:[%s2145_s2 + $0x40] sm:$0xff] %v1569_v44  ;;  %1582 = vtanh.f32 %v748_v43 }
 0x122   :  { %v1573_v48 = vpop.eup %1572  ;;  %1188 = vst [vmem:[%s2145_s2 + $0x170] sm:$0xff] %v1571_v47 }
 0x123   :  { %v1575_v49 = vpop.eup %1574  ;;  %1151 = vst [vmem:[%s2145_s2 + $0x48] sm:$0xff] %v1573_v48 }
 0x124   :  { %1189 = vst [vmem:[%s2145_s2 + $0x178] sm:$0xff] %v1575_v49 }
 0x125   :  { %v601_v50 = vpop.f32.mrb[24].mxu0  ;;  %v753_v51 = vpop.f32.mrb[24].mxu1 }
 0x126   :  { %1584 = vtanh.f32 %v601_v50  ;;  %v1351_v52 = vpop.f32.mrb[25].mxu0  ;;  %v1427_v53 = vpop.f32.mrb[25].mxu1 }
 0x127   :  { %v604_v54 = vpop.f32.mrb[26].mxu0  ;;  %1586 = vtanh.f32 %v753_v51  ;;  %v756_v55 = vpop.f32.mrb[26].mxu1 }
 0x128   :  { %v1577_v56 = vpop.eup %1576  ;;  %1588 = vtanh.f32 %v604_v54  ;;  %v1352_v57 = vpop.f32.mrb[27].mxu0 }
 0x129   :  { %v1428_v58 = vpop.f32.mrb[27].mxu1  ;;  %v1579_v59 = vpop.eup %1578  ;;  %1152 = vst [vmem:[%s2145_s2 + $0x50] sm:$0xff] %v1577_v56  ;;  %1590 = vtanh.f32 %v756_v55 }
 0x12a   :  { %v1581_v60 = vpop.eup %1580  ;;  %1190 = vst [vmem:[%s2145_s2 + $0x180] sm:$0xff] %v1579_v59 }
 0x12b   :  { %v1583_v61 = vpop.eup %1582  ;;  %1153 = vst [vmem:[%s2145_s2 + $0x58] sm:$0xff] %v1581_v60 }
 0x12c   :  { %1191 = vst [vmem:[%s2145_s2 + $0x188] sm:$0xff] %v1583_v61 }
 0x12d   :  { %v609_v62 = vpop.f32.mrb[28].mxu0  ;;  %v761_v63 = vpop.f32.mrb[28].mxu1 }
 0x12e   :  { %1592 = vtanh.f32 %v609_v62  ;;  %v1355_v0 = vpop.f32.mrb[29].mxu0  ;;  %v1431_v1 = vpop.f32.mrb[29].mxu1 }
 0x12f   :  { %v612_v2 = vpop.f32.mrb[30].mxu0  ;;  %1594 = vtanh.f32 %v761_v63  ;;  %v764_v3 = vpop.f32.mrb[30].mxu1 }
 0x130   :  { %v1585_v4 = vpop.eup %1584  ;;  %1596 = vtanh.f32 %v612_v2  ;;  %v1356_v5 = vpop.f32.mrb[31].mxu0 }
 0x131   :  { %v1432_v6 = vpop.f32.mrb[31].mxu1  ;;  %v1587_v7 = vpop.eup %1586  ;;  %1154 = vst [vmem:[%s2145_s2 + $0x60] sm:$0xff] %v1585_v4  ;;  %1598 = vtanh.f32 %v764_v3 }
 0x132   :  { %v1589_v8 = vpop.eup %1588  ;;  %1192 = vst [vmem:[%s2145_s2 + $0x190] sm:$0xff] %v1587_v7 }
 0x133   :  { %v1591_v9 = vpop.eup %1590  ;;  %1155 = vst [vmem:[%s2145_s2 + $0x68] sm:$0xff] %v1589_v8 }
 0x134   :  { %1193 = vst [vmem:[%s2145_s2 + $0x198] sm:$0xff] %v1591_v9 }
 0x135   :  { %v617_v10 = vpop.f32.mrb[32].mxu0  ;;  %v769_v11 = vpop.f32.mrb[32].mxu1 }
 0x136   :  { %1600 = vtanh.f32 %v617_v10  ;;  %v1359_v12 = vpop.f32.mrb[33].mxu0  ;;  %v1435_v13 = vpop.f32.mrb[33].mxu1 }
 0x137   :  { %v620_v14 = vpop.f32.mrb[34].mxu0  ;;  %1602 = vtanh.f32 %v769_v11  ;;  %v772_v15 = vpop.f32.mrb[34].mxu1 }
 0x138   :  { %v1593_v16 = vpop.eup %1592  ;;  %1604 = vtanh.f32 %v620_v14  ;;  %v1360_v17 = vpop.f32.mrb[35].mxu0 }
 0x139   :  { %v1436_v18 = vpop.f32.mrb[35].mxu1  ;;  %v1595_v19 = vpop.eup %1594  ;;  %1156 = vst [vmem:[%s2145_s2 + $0x70] sm:$0xff] %v1593_v16  ;;  %1606 = vtanh.f32 %v772_v15 }
 0x13a   :  { %v1597_v20 = vpop.eup %1596  ;;  %1194 = vst [vmem:[%s2145_s2 + $0x1a0] sm:$0xff] %v1595_v19 }
 0x13b   :  { %v1599_v21 = vpop.eup %1598  ;;  %1157 = vst [vmem:[%s2145_s2 + $0x78] sm:$0xff] %v1597_v20 }
 0x13c   :  { %1195 = vst [vmem:[%s2145_s2 + $0x1a8] sm:$0xff] %v1599_v21 }
 0x13d   :  { %v625_v22 = vpop.f32.mrb[36].mxu0  ;;  %v777_v23 = vpop.f32.mrb[36].mxu1 }
 0x13e   :  { %1608 = vtanh.f32 %v625_v22  ;;  %v1363_v24 = vpop.f32.mrb[37].mxu0  ;;  %v1439_v25 = vpop.f32.mrb[37].mxu1 }
 0x13f   :  { %v628_v26 = vpop.f32.mrb[38].mxu0  ;;  %1610 = vtanh.f32 %v777_v23  ;;  %v780_v27 = vpop.f32.mrb[38].mxu1 }
 0x140   :  { %v1601_v28 = vpop.eup %1600  ;;  %1612 = vtanh.f32 %v628_v26  ;;  %v1364_v29 = vpop.f32.mrb[39].mxu0 }
 0x141   :  { %v1440_v30 = vpop.f32.mrb[39].mxu1  ;;  %v1603_v31 = vpop.eup %1602  ;;  %1158 = vst [vmem:[%s2145_s2 + $0x80] sm:$0xff] %v1601_v28  ;;  %1614 = vtanh.f32 %v780_v27 }
 0x142   :  { %v1605_v32 = vpop.eup %1604  ;;  %1196 = vst [vmem:[%s2145_s2 + $0x1b0] sm:$0xff] %v1603_v31 }
 0x143   :  { %v1607_v33 = vpop.eup %1606  ;;  %1159 = vst [vmem:[%s2145_s2 + $0x88] sm:$0xff] %v1605_v32 }
 0x144   :  { %1197 = vst [vmem:[%s2145_s2 + $0x1b8] sm:$0xff] %v1607_v33 }
 0x145   :  { %v633_v34 = vpop.f32.mrb[40].mxu0  ;;  %v785_v35 = vpop.f32.mrb[40].mxu1 }
 0x146   :  { %1616 = vtanh.f32 %v633_v34  ;;  %v1367_v36 = vpop.f32.mrb[41].mxu0  ;;  %v1443_v37 = vpop.f32.mrb[41].mxu1 }
 0x147   :  { %v636_v38 = vpop.f32.mrb[42].mxu0  ;;  %1618 = vtanh.f32 %v785_v35  ;;  %v788_v39 = vpop.f32.mrb[42].mxu1 }
 0x148   :  { %v1609_v40 = vpop.eup %1608  ;;  %1620 = vtanh.f32 %v636_v38  ;;  %v1368_v41 = vpop.f32.mrb[43].mxu0 }
 0x149   :  { %v1444_v42 = vpop.f32.mrb[43].mxu1  ;;  %v1611_v43 = vpop.eup %1610  ;;  %1160 = vst [vmem:[%s2145_s2 + $0x90] sm:$0xff] %v1609_v40  ;;  %1622 = vtanh.f32 %v788_v39 }
 0x14a   :  { %v1613_v44 = vpop.eup %1612  ;;  %1198 = vst [vmem:[%s2145_s2 + $0x1c0] sm:$0xff] %v1611_v43 }
 0x14b   :  { %v1615_v45 = vpop.eup %1614  ;;  %1161 = vst [vmem:[%s2145_s2 + $0x98] sm:$0xff] %v1613_v44 }
 0x14c   :  { %1199 = vst [vmem:[%s2145_s2 + $0x1c8] sm:$0xff] %v1615_v45 }
 0x14d   :  { %v641_v46 = vpop.f32.mrb[44].mxu0  ;;  %v793_v47 = vpop.f32.mrb[44].mxu1 }
 0x14e   :  { %1624 = vtanh.f32 %v641_v46  ;;  %v1371_v48 = vpop.f32.mrb[45].mxu0  ;;  %v1447_v49 = vpop.f32.mrb[45].mxu1 }
 0x14f   :  { %v644_v50 = vpop.f32.mrb[46].mxu0  ;;  %1626 = vtanh.f32 %v793_v47  ;;  %v796_v51 = vpop.f32.mrb[46].mxu1 }
 0x150   :  { %v1617_v52 = vpop.eup %1616  ;;  %1628 = vtanh.f32 %v644_v50  ;;  %v1372_v53 = vpop.f32.mrb[47].mxu0 }
 0x151   :  { %v1448_v54 = vpop.f32.mrb[47].mxu1  ;;  %v1619_v55 = vpop.eup %1618  ;;  %1162 = vst [vmem:[%s2145_s2 + $0xa0] sm:$0xff] %v1617_v52  ;;  %1630 = vtanh.f32 %v796_v51 }
 0x152   :  { %v1621_v56 = vpop.eup %1620  ;;  %1200 = vst [vmem:[%s2145_s2 + $0x1d0] sm:$0xff] %v1619_v55 }
 0x153   :  { %v1623_v57 = vpop.eup %1622  ;;  %1163 = vst [vmem:[%s2145_s2 + $0xa8] sm:$0xff] %v1621_v56 }
 0x154   :  { %1201 = vst [vmem:[%s2145_s2 + $0x1d8] sm:$0xff] %v1623_v57 }
 0x155   :  { %v649_v58 = vpop.f32.mrb[48].mxu0  ;;  %v801_v59 = vpop.f32.mrb[48].mxu1 }
 0x156   :  { %1632 = vtanh.f32 %v649_v58  ;;  %v1375_v60 = vpop.f32.mrb[49].mxu0  ;;  %v1451_v61 = vpop.f32.mrb[49].mxu1 }
 0x157   :  { %v652_v62 = vpop.f32.mrb[50].mxu0  ;;  %1634 = vtanh.f32 %v801_v59  ;;  %v804_v63 = vpop.f32.mrb[50].mxu1 }
 0x158   :  { %v1625_v0 = vpop.eup %1624  ;;  %1636 = vtanh.f32 %v652_v62  ;;  %v1376_v1 = vpop.f32.mrb[51].mxu0 }
 0x159   :  { %v1452_v2 = vpop.f32.mrb[51].mxu1  ;;  %v1627_v3 = vpop.eup %1626  ;;  %1164 = vst [vmem:[%s2145_s2 + $0xb0] sm:$0xff] %v1625_v0  ;;  %1638 = vtanh.f32 %v804_v63 }
 0x15a   :  { %v1629_v4 = vpop.eup %1628  ;;  %1202 = vst [vmem:[%s2145_s2 + $0x1e0] sm:$0xff] %v1627_v3 }
 0x15b   :  { %v1631_v5 = vpop.eup %1630  ;;  %1165 = vst [vmem:[%s2145_s2 + $0xb8] sm:$0xff] %v1629_v4 }
 0x15c   :  { %1203 = vst [vmem:[%s2145_s2 + $0x1e8] sm:$0xff] %v1631_v5 }
 0x15d   :  { %v657_v6 = vpop.f32.mrb[52].mxu0  ;;  %v809_v7 = vpop.f32.mrb[52].mxu1 }
 0x15e   :  { %1640 = vtanh.f32 %v657_v6  ;;  %v1379_v8 = vpop.f32.mrb[53].mxu0  ;;  %v1455_v9 = vpop.f32.mrb[53].mxu1 }
 0x15f   :  { %v660_v10 = vpop.f32.mrb[54].mxu0  ;;  %1642 = vtanh.f32 %v809_v7  ;;  %v812_v11 = vpop.f32.mrb[54].mxu1 }
 0x160   :  { %v1633_v12 = vpop.eup %1632  ;;  %1644 = vtanh.f32 %v660_v10  ;;  %v1380_v13 = vpop.f32.mrb[55].mxu0 }
 0x161   :  { %v1456_v14 = vpop.f32.mrb[55].mxu1  ;;  %v1635_v15 = vpop.eup %1634  ;;  %1166 = vst [vmem:[%s2145_s2 + $0xc0] sm:$0xff] %v1633_v12  ;;  %1646 = vtanh.f32 %v812_v11 }
 0x162   :  { %v1637_v16 = vpop.eup %1636  ;;  %1204 = vst [vmem:[%s2145_s2 + $0x1f0] sm:$0xff] %v1635_v15 }
 0x163   :  { %v1639_v17 = vpop.eup %1638  ;;  %1167 = vst [vmem:[%s2145_s2 + $0xc8] sm:$0xff] %v1637_v16 }
 0x164   :  { %1205 = vst [vmem:[%s2145_s2 + $0x1f8] sm:$0xff] %v1639_v17 }
 0x165   :  { %v665_v18 = vpop.f32.mrb[56].mxu0  ;;  %v817_v19 = vpop.f32.mrb[56].mxu1 }
 0x166   :  { %1648 = vtanh.f32 %v665_v18  ;;  %v1383_v20 = vpop.f32.mrb[57].mxu0  ;;  %v1459_v21 = vpop.f32.mrb[57].mxu1 }
 0x167   :  { %v668_v22 = vpop.f32.mrb[58].mxu0  ;;  %1650 = vtanh.f32 %v817_v19  ;;  %v820_v23 = vpop.f32.mrb[58].mxu1 }
 0x168   :  { %v1641_v24 = vpop.eup %1640  ;;  %1652 = vtanh.f32 %v668_v22  ;;  %v1384_v25 = vpop.f32.mrb[59].mxu0 }
 0x169   :  { %v1460_v26 = vpop.f32.mrb[59].mxu1  ;;  %v1643_v27 = vpop.eup %1642  ;;  %1168 = vst [vmem:[%s2145_s2 + $0xd0] sm:$0xff] %v1641_v24  ;;  %1654 = vtanh.f32 %v820_v23 }
 0x16a   :  { %v1645_v28 = vpop.eup %1644  ;;  %1206 = vst [vmem:[%s2145_s2 + $0x200] sm:$0xff] %v1643_v27 }
 0x16b   :  { %v1647_v29 = vpop.eup %1646  ;;  %1169 = vst [vmem:[%s2145_s2 + $0xd8] sm:$0xff] %v1645_v28 }
 0x16c   :  { %1207 = vst [vmem:[%s2145_s2 + $0x208] sm:$0xff] %v1647_v29 }
 0x16d   :  { %v673_v30 = vpop.f32.mrb[60].mxu0  ;;  %v825_v31 = vpop.f32.mrb[60].mxu1 }
 0x16e   :  { %1656 = vtanh.f32 %v673_v30  ;;  %v1387_v32 = vpop.f32.mrb[61].mxu0  ;;  %v1463_v33 = vpop.f32.mrb[61].mxu1 }
 0x16f   :  { %v676_v34 = vpop.f32.mrb[62].mxu0  ;;  %1658 = vtanh.f32 %v825_v31  ;;  %v828_v35 = vpop.f32.mrb[62].mxu1 }
 0x170   :  { %v1649_v36 = vpop.eup %1648  ;;  %1660 = vtanh.f32 %v676_v34  ;;  %v1388_v37 = vpop.f32.mrb[63].mxu0 }
 0x171   :  { %v1464_v38 = vpop.f32.mrb[63].mxu1  ;;  %v1651_v39 = vpop.eup %1650  ;;  %1170 = vst [vmem:[%s2145_s2 + $0xe0] sm:$0xff] %v1649_v36  ;;  %1662 = vtanh.f32 %v828_v35 }
 0x172   :  { %v1653_v40 = vpop.eup %1652  ;;  %1208 = vst [vmem:[%s2145_s2 + $0x210] sm:$0xff] %v1651_v39 }
 0x173   :  { %v1655_v41 = vpop.eup %1654  ;;  %1171 = vst [vmem:[%s2145_s2 + $0xe8] sm:$0xff] %v1653_v40 }
 0x174   :  { %1209 = vst [vmem:[%s2145_s2 + $0x218] sm:$0xff] %v1655_v41 }
 0x175   :  { %v681_v42 = vpop.f32.mrb[64].mxu0  ;;  %v833_v43 = vpop.f32.mrb[64].mxu1 }
 0x176   :  { %1664 = vtanh.f32 %v681_v42  ;;  %v1391_v44 = vpop.f32.mrb[65].mxu0  ;;  %v1467_v45 = vpop.f32.mrb[65].mxu1 }
 0x177   :  { %v684_v46 = vpop.f32.mrb[66].mxu0  ;;  %1666 = vtanh.f32 %v833_v43  ;;  %v836_v47 = vpop.f32.mrb[66].mxu1 }
 0x178   :  { %v1657_v48 = vpop.eup %1656  ;;  %1668 = vtanh.f32 %v684_v46  ;;  %v1392_v49 = vpop.f32.mrb[67].mxu0 }
 0x179   :  { %v1468_v50 = vpop.f32.mrb[67].mxu1  ;;  %v1659_v51 = vpop.eup %1658  ;;  %1172 = vst [vmem:[%s2145_s2 + $0xf0] sm:$0xff] %v1657_v48  ;;  %1670 = vtanh.f32 %v836_v47 }
 0x17a   :  { %v1661_v52 = vpop.eup %1660  ;;  %1210 = vst [vmem:[%s2145_s2 + $0x220] sm:$0xff] %v1659_v51 }
 0x17b   :  { %v1663_v53 = vpop.eup %1662  ;;  %1173 = vst [vmem:[%s2145_s2 + $0xf8] sm:$0xff] %v1661_v52 }
 0x17c   :  { %1211 = vst [vmem:[%s2145_s2 + $0x228] sm:$0xff] %v1663_v53 }
 0x17d   :  { %v689_v54 = vpop.f32.mrb[68].mxu0  ;;  %v841_v55 = vpop.f32.mrb[68].mxu1 }
 0x17e   :  { %1672 = vtanh.f32 %v689_v54  ;;  %v1395_v56 = vpop.f32.mrb[69].mxu0  ;;  %v1471_v57 = vpop.f32.mrb[69].mxu1 }
 0x17f   :  { %v692_v58 = vpop.f32.mrb[70].mxu0  ;;  %1674 = vtanh.f32 %v841_v55  ;;  %v844_v59 = vpop.f32.mrb[70].mxu1 }
 0x180   :  { %v1665_v60 = vpop.eup %1664  ;;  %1676 = vtanh.f32 %v692_v58  ;;  %v1396_v61 = vpop.f32.mrb[71].mxu0 }
 0x181   :  { %v1472_v62 = vpop.f32.mrb[71].mxu1  ;;  %v1667_v63 = vpop.eup %1666  ;;  %1174 = vst [vmem:[%s2145_s2 + $0x100] sm:$0xff] %v1665_v60 }
 0x182   :  { %v1669_v0 = vpop.eup %1668  ;;  %1212 = vst [vmem:[%s2145_s2 + $0x230] sm:$0xff] %v1667_v63 }
 0x183   :  { %v1671_v1 = vpop.eup %1670  ;;  %1175 = vst [vmem:[%s2145_s2 + $0x108] sm:$0xff] %v1669_v0 }
 0x184   :  { %1213 = vst [vmem:[%s2145_s2 + $0x238] sm:$0xff] %v1671_v1 }
 0x185   :  { %v697_v2 = vpop.f32.mrb[72].mxu0 }
 0x186   :  { %1678 = vtanh.f32 %v697_v2  ;;  %v1399_v3 = vpop.f32.mrb[73].mxu0 }
 0x187   :  { %v700_v4 = vpop.f32.mrb[74].mxu0 }
 0x188   :  { %v1673_v5 = vpop.eup %1672  ;;  %1680 = vtanh.f32 %v700_v4  ;;  %v1400_v6 = vpop.f32.mrb[75].mxu0 }
 0x189   :  { %v1675_v7 = vpop.eup %1674  ;;  %1176 = vst [vmem:[%s2145_s2 + $0x110] sm:$0xff] %v1673_v5 }
 0x18a   :  { %v1677_v8 = vpop.eup %1676  ;;  %1214 = vst [vmem:[%s2145_s2 + $0x240] sm:$0xff] %v1675_v7 }
 0x18b   :  { %1177 = vst [vmem:[%s2145_s2 + $0x118] sm:$0xff] %v1677_v8 }
 0x190   :  { %v1679_v9 = vpop.eup %1678 }
 0x191   :  { %1178 = vst [vmem:[%s2145_s2 + $0x120] sm:$0xff] %v1679_v9 }
 0x192   :  { %v1681_v10 = vpop.eup %1680 }
 0x193   :  { %1179 = vst [vmem:[%s2145_s2 + $0x128] sm:$0xff] %v1681_v10 }

</bundles_post_ra>
